<compile_context>
chip_gen: v7x
topology: tpu7x:2x2x1
jax: 0.10.0
libtpu: 0.0.40
codegen_flags: <defaults>
</compile_context>

<pallas_src>
import jax
import jax.numpy as jnp
from jax import lax
from jax.experimental import pallas as pl
from jax.experimental.pallas import tpu as pltpu

NEG_INF = -1e30  # large finite negative; exp() underflows to exactly 0, no inf math


def _layernorm(v, gamma, beta, eps=1e-5):
    mu = jnp.mean(v, axis=-1, keepdims=True)
    var = jnp.mean((v - mu) ** 2, axis=-1, keepdims=True)
    return (v - mu) * lax.rsqrt(var + eps) * gamma + beta


def _const_spec(shape, single_buffer):
    """BlockSpec for an operand whose block index never changes (weights, LN params)."""
    index_map = lambda *_: (0,) * len(shape)
    if single_buffer:
        # Single-buffer constant weights (reclaims ~half the weight VMEM, key on v7x).
        return pl.BlockSpec(shape, index_map, pipeline_mode=pl.Buffered(1))
    return pl.BlockSpec(shape, index_map)


def _vmem_limit_bytes():
    try:
        cap = pltpu.get_tpu_info().vmem_capacity_bytes
    except Exception:
        return None  # unknown chip: keep the compiler default
    # ~80% of physical VMEM: ~102 MiB on v5e/v6e (128 MiB), ~51 MiB on v7x (64 MiB).
    return min(max(int(cap * 0.8), 16 * 1024 * 1024), 120 * 1024 * 1024)


# --------------------------- kernel 1: LN1 + fused QKV ---------------------------
def _qkv_kernel(x_ref, ln1_g_ref, ln1_b_ref, wqkv_ref, q_ref, k_ref, v_ref):
    nh, bt, hd = q_ref.shape[1:]
    C = nh * hd
    scale = 1.0 / (hd ** 0.5)

    xn = _layernorm(x_ref[0].astype(jnp.float32), ln1_g_ref[0], ln1_b_ref[0])
    # One lane-dense (bt, C) x (C, 3C) MXU matmul, f32 accumulation.
    yqkv = jnp.dot(xn.astype(jnp.bfloat16), wqkv_ref[...],
                   preferred_element_type=jnp.float32)
    yq = (yqkv[:, 0 * C:1 * C] * scale).astype(jnp.bfloat16)  # fold 1/sqrt(hd) into Q
    yk = yqkv[:, 1 * C:2 * C].astype(jnp.bfloat16)
    yv = yqkv[:, 2 * C:3 * C].astype(jnp.bfloat16)
    # Split heads with static lane slices (once per token tile, not per KV step).
    for h in range(nh):
        sl = slice(h * hd, (h + 1) * hd)
        q_ref[0, h, :, :] = yq[:, sl]
        k_ref[0, h, :, :] = yk[:, sl]
        v_ref[0, h, :, :] = yv[:, sl]


# ----------------------- kernel 2: causal flash attention ------------------------
def _flash_attn_kernel(q_ref, k_ref, v_ref, o_ref, m_s, l_s, acc_s):
    qi = pl.program_id(1)
    ki = pl.program_id(2)
    nk = pl.num_programs(2)

    _, nh, block_q, hd = q_ref.shape
    block_k = k_ref.shape[2]

    q_start = qi * block_q
    kv_start = ki * block_k
    q_last = q_start + (block_q - 1)
    kv_last = kv_start + (block_k - 1)

    @pl.when(ki == 0)
    def _init():
        m_s[...] = jnp.full(m_s.shape, NEG_INF, dtype=m_s.dtype)
        l_s[...] = jnp.zeros_like(l_s)
        acc_s[...] = jnp.zeros_like(acc_s)

    def update(apply_mask):
        # Batched-head scores (nh, bq, bk), f32 accumulation on the MXU.
        s = jnp.einsum("hqd,hkd->hqk", q_ref[0], k_ref[0],
                       preferred_element_type=jnp.float32)
        if apply_mask:  # only diagonal-straddling tiles pay for the mask
            rows = q_start + lax.broadcasted_iota(jnp.int32, (block_q, block_k), 0)
            cols = kv_start + lax.broadcasted_iota(jnp.int32, (block_q, block_k), 1)
            s = s + jnp.where(cols <= rows, 0.0, NEG_INF)[None, :, :]
        m_prev = m_s[...]                                   # (nh, bq)
        m_new = jnp.maximum(m_prev, jnp.max(s, axis=-1))
        alpha = jnp.exp(m_prev - m_new)
        p = jnp.exp(s - m_new[:, :, None])
        l_s[...] = alpha * l_s[...] + jnp.sum(p, axis=-1)
        acc_s[...] = alpha[:, :, None] * acc_s[...] + jnp.einsum(
            "hqk,hkd->hqd", p.astype(jnp.bfloat16), v_ref[0],
            preferred_element_type=jnp.float32)
        m_s[...] = m_new

    # Interior (fully visible) KV tile: no mask work at all.
    @pl.when(kv_last <= q_start)
    def _interior():
        update(apply_mask=False)

    # Diagonal-straddling KV tile: apply the causal bias.
    @pl.when(jnp.logical_and(kv_start <= q_last, kv_last > q_start))
    def _diagonal():
        update(apply_mask=True)

    # kv_start > q_last: fully-masked future tile -> compute skipped; its DMA is
    # also suppressed by the clamped K/V index_map in the wrapper.

    @pl.when(ki == nk - 1)
    def _finalize():
        inv_l = pl.reciprocal(l_s[...], approx=True)
        o_ref[0] = (acc_s[...] * inv_l[:, :, None]).astype(o_ref.dtype)


# ----------------- kernel 3: residual + LN2 + SiLU MLP + residual ----------------
def _mlp_kernel(x_ref, attn_ref, ln2_g_ref, ln2_b_ref,
                w1_ref, b1_ref, w2_ref, b2_ref, o_ref):
    x2 = x_ref[0].astype(jnp.float32) + attn_ref[0]
    x2n = _layernorm(x2, ln2_g_ref[0], ln2_b_ref[0])
    h1 = jnp.dot(x2n.astype(jnp.bfloat16), w1_ref[...],
                 preferred_element_type=jnp.float32) + b1_ref[0]
    h1 = h1 * jax.nn.sigmoid(h1)      # SiLU in f32 (no bf16 VPU/EUP on v5e)
    h2 = jnp.dot(h1.astype(jnp.bfloat16), w2_ref[...],
                 preferred_element_type=jnp.float32) + b2_ref[0]
    o_ref[0] = (x2 + h2).astype(o_ref.dtype)


# ----------------------------------- wrapper -------------------------------------
def _gpt_block(x, params, *, n_heads, block_q, block_k, block_t, single_buffer_weights):
    B, T, C = x.shape
    H = 4 * C
    assert C % n_heads == 0
    hd = C // n_heads
    (wq_t, wk_t, wv_t, ln1_g, ln1_b, ln2_g, ln2_b, w1_t, b1, w2_t, b2) = params

    def pick(b, target=256):
        if b is None:
            b = min(T, target)
            while T % b:
                b //= 2
        return b

    block_q, block_k, block_t = pick(block_q), pick(block_k), pick(block_t)
    assert T % block_q == 0 and T % block_k == 0 and T % block_t == 0
    nq, nk, nt = T // block_q, T // block_k, T // block_t

    vmem_limit = _vmem_limit_bytes()

    def cs(shape):
        return _const_spec(shape, single_buffer_weights)

    # Fused, pre-transposed QKV weight (C, 3C); bf16 operands for the MXU.
    wqkv = jnp.concatenate([wq_t, wk_t, wv_t], axis=1).astype(jnp.bfloat16)
    w1_b = w1_t.astype(jnp.bfloat16)
    w2_b = w2_t.astype(jnp.bfloat16)

    # ---- kernel 1: LN1 + fused QKV projection (once per token) ----
    qkv_out_shape = jax.ShapeDtypeStruct((B, n_heads, T, hd), jnp.bfloat16)
    qkv_out_spec = pl.BlockSpec((1, n_heads, block_t, hd), lambda b, t: (b, 0, t, 0))
    q, k, v = pl.pallas_call(
        _qkv_kernel,
        out_shape=[qkv_out_shape, qkv_out_shape, qkv_out_shape],
        grid_spec=pltpu.PrefetchScalarGridSpec(
            num_scalar_prefetch=0,
            grid=(B, nt),
            in_specs=[
                pl.BlockSpec((1, block_t, C), lambda b, t: (b, t, 0)),  # x tile
                cs((1, C)), cs((1, C)),                                  # ln1 gamma/beta
                cs((C, 3 * C)),                                          # fused Wqkv
            ],
            out_specs=[qkv_out_spec, qkv_out_spec, qkv_out_spec],
        ),
        compiler_params=pltpu.CompilerParams(
            dimension_semantics=("parallel", "parallel"),
            vmem_limit_bytes=vmem_limit),
    )(x, ln1_g, ln1_b, wqkv)

    # ---- kernel 2: flash attention over KV tiles ----
    def kv_index_map(b, qi, ki):
        # Clamp to the last causally-needed KV block: fully-masked future tiles map
        # to an already-fetched block (no wasted DMA); their compute is skipped.
        last_needed = ((qi + 1) * block_q - 1) // block_k
        return (b, 0, jnp.minimum(ki, last_needed), 0)

    attn_hm = pl.pallas_call(
        _flash_attn_kernel,
        out_shape=jax.ShapeDtypeStruct((B, n_heads, T, hd), jnp.float32),
        grid_spec=pltpu.PrefetchScalarGridSpec(
            num_scalar_prefetch=0,
            grid=(B, nq, nk),
            in_specs=[
                pl.BlockSpec((1, n_heads, block_q, hd), lambda b, qi, ki: (b, 0, qi, 0)),
                pl.BlockSpec((1, n_heads, block_k, hd), kv_index_map),
                pl.BlockSpec((1, n_heads, block_k, hd), kv_index_map),
            ],
            out_specs=pl.BlockSpec((1, n_heads, block_q, hd),
                                   lambda b, qi, ki: (b, 0, qi, 0)),
            scratch_shapes=[
                pltpu.VMEM((n_heads, block_q), jnp.float32),      # running max
                pltpu.VMEM((n_heads, block_q), jnp.float32),      # running sum
                pltpu.VMEM((n_heads, block_q, hd), jnp.float32),  # output accumulator
            ],
        ),
        compiler_params=pltpu.CompilerParams(
            dimension_semantics=("parallel", "parallel", "arbitrary"),
            vmem_limit_bytes=vmem_limit),
    )(q, k, v)

    # Head merge (B, nh, T, hd) -> (B, T, C): one cheap XLA transpose per token.
    attn = attn_hm.swapaxes(1, 2).reshape(B, T, C)

    # ---- kernel 3: residual + LN2 + SiLU MLP + residual ----
    out = pl.pallas_call(
        _mlp_kernel,
        out_shape=jax.ShapeDtypeStruct((B, T, C), x.dtype),
        grid_spec=pltpu.PrefetchScalarGridSpec(
            num_scalar_prefetch=0,
            grid=(B, nt),
            in_specs=[
                pl.BlockSpec((1, block_t, C), lambda b, t: (b, t, 0)),  # original inputs
                pl.BlockSpec((1, block_t, C), lambda b, t: (b, t, 0)),  # attention out
                cs((1, C)), cs((1, C)),                                  # ln2 gamma/beta
                cs((C, H)), cs((1, H)),                                  # f1 W^T, bias
                cs((H, C)), cs((1, C)),                                  # f2 W^T, bias
            ],
            out_specs=pl.BlockSpec((1, block_t, C), lambda b, t: (b, t, 0)),
        ),
        compiler_params=pltpu.CompilerParams(
            dimension_semantics=("parallel", "parallel"),
            vmem_limit_bytes=vmem_limit),
    )(x, attn, ln2_g, ln2_b, w1_b, b1, w2_b, b2)
    return out


def gpt_block(x, params, *, n_heads, block_q=None, block_k=None, block_t=None):
    try:
        return _gpt_block(x, params, n_heads=n_heads, block_q=block_q, block_k=block_k,
                          block_t=block_t, single_buffer_weights=True)
    except Exception:
        # pl.Buffered(1) single-buffering unavailable on this jax version / chip:
        # retry with default double-buffered weights (identical numerics).
        return _gpt_block(x, params, n_heads=n_heads, block_q=block_q, block_k=block_k,
                          block_t=block_t, single_buffer_weights=False)


def reference_gpt_block(x, params, *, n_heads):
    """Pure-JAX f32 reference matching the PyTorch forward (eval mode)."""
    (wq_t, wk_t, wv_t, ln1_g, ln1_b, ln2_g, ln2_b, w1_t, b1, w2_t, b2) = params
    B, T, C = x.shape
    hd = C // n_heads

    def ln(v, g, b):
        mu = v.mean(-1, keepdims=True)
        var = ((v - mu) ** 2).mean(-1, keepdims=True)
        return (v - mu) / jnp.sqrt(var + 1e-5) * g + b

    xn = ln(x, ln1_g[0], ln1_b[0])
    q = (xn @ wq_t).reshape(B, T, n_heads, hd).transpose(0, 2, 1, 3)
    k = (xn @ wk_t).reshape(B, T, n_heads, hd).transpose(0, 2, 1, 3)
    v = (xn @ wv_t).reshape(B, T, n_heads, hd).transpose(0, 2, 1, 3)
    s = jnp.einsum("bhqd,bhkd->bhqk", q, k) / jnp.sqrt(hd)
    mask = jnp.tril(jnp.ones((T, T), bool))
    s = jnp.where(mask, s, -jnp.inf)
    p = jax.nn.softmax(s, axis=-1)
    attn = jnp.einsum("bhqk,bhkd->bhqd", p, v).transpose(0, 2, 1, 3).reshape(B, T, C)
    x2 = x + attn
    x2n = ln(x2, ln2_g[0], ln2_b[0])
    h1 = x2n @ w1_t + b1[0]
    h1 = h1 * jax.nn.sigmoid(h1)
    return x2 + (h1 @ w2_t + b2[0])


if __name__ == "__main__":
    B, T, C, n_heads = 2, 16, 32, 2
    H = 4 * C

    key = jax.random.PRNGKey(0)
    ks = jax.random.split(key, 12)

    x = jax.random.normal(ks[0], (B, T, C), jnp.float32)

    # Deterministic parameter init (shapes follow the PyTorch module __init__,
    # linear weights pre-transposed to (in_features, out_features)).
    wq_t = jax.random.normal(ks[1], (C, C), jnp.float32) * 0.05   # Q.weight^T
    wk_t = jax.random.normal(ks[2], (C, C), jnp.float32) * 0.05   # K.weight^T
    wv_t = jax.random.normal(ks[3], (C, C), jnp.float32) * 0.05   # V.weight^T
    ln1_g = 1.0 + 0.1 * jax.random.normal(ks[8], (1, C), jnp.float32)
    ln1_b = 0.1 * jax.random.normal(ks[9], (1, C), jnp.float32)
    ln2_g = 1.0 + 0.1 * jax.random.normal(ks[10], (1, C), jnp.float32)
    ln2_b = 0.1 * jax.random.normal(ks[11], (1, C), jnp.float32)
    w1_t = jax.random.normal(ks[4], (C, H), jnp.float32) * 0.05   # f1.weight^T
    b1 = jax.random.normal(ks[5], (1, H), jnp.float32) * 0.05     # f1.bias
    w2_t = jax.random.normal(ks[6], (H, C), jnp.float32) * 0.05   # f2.weight^T
    b2 = jax.random.normal(ks[7], (1, C), jnp.float32) * 0.05     # f2.bias

    params = (wq_t, wk_t, wv_t, ln1_g, ln1_b, ln2_g, ln2_b, w1_t, b1, w2_t, b2)

    # Small tiles so the grid exercises multiple query / kv / token tiles, including
    # an interior (unmasked), a diagonal (masked) and a fully-masked future KV tile.
    out = gpt_block(x, params, n_heads=n_heads, block_q=8, block_k=8, block_t=8)
    out = jax.block_until_ready(out)

    ref = reference_gpt_block(x, params, n_heads=n_heads)
    assert out.shape == (B, T, C)
    err = float(jnp.max(jnp.abs(out - ref)))
    # Tolerance accounts for bf16 MXU operands (f32 accumulation) vs the f32 reference.
    assert jnp.allclose(out, ref, atol=5e-2, rtol=5e-2), (
        f"mismatch vs reference (max abs err {err})")

    print("KERNEL_OK")
</pallas_src>

<mosaic_0001>
module attributes {stable_mosaic.version = 11 : i64} {
  func.func @_qkv_kernel(%arg0: i32, %arg1: i32, %arg2: memref<1x8x32xf32, #tpu.memory_space<vmem>>, %arg3: memref<1x32xf32, #tpu.memory_space<vmem>>, %arg4: memref<1x32xf32, #tpu.memory_space<vmem>>, %arg5: memref<32x96xbf16, #tpu.memory_space<vmem>>, %arg6: memref<1x2x8x16xbf16, #tpu.memory_space<vmem>>, %arg7: memref<1x2x8x16xbf16, #tpu.memory_space<vmem>>, %arg8: memref<1x2x8x16xbf16, #tpu.memory_space<vmem>>) attributes {dimension_semantics = [#tpu.dimension_semantics<parallel>, #tpu.dimension_semantics<parallel>], iteration_bounds = array<i64: 2, 2>, scalar_prefetch = 0 : i64, scratch_operands = 0 : i64, tpu.core_type = #tpu.core_type<tc>, window_params = [{transform_indices = @transform_0, window_bounds = array<i64: 1, 8, 32>}, {pipeline_mode = #tpu.pipeline_mode<synchronous>, transform_indices = @transform_1, window_bounds = array<i64: 1, 32>}, {pipeline_mode = #tpu.pipeline_mode<synchronous>, transform_indices = @transform_2, window_bounds = array<i64: 1, 32>}, {pipeline_mode = #tpu.pipeline_mode<synchronous>, transform_indices = @transform_3, window_bounds = array<i64: 32, 96>}, {transform_indices = @transform_4, window_bounds = array<i64: 1, 2, 8, 16>}, {transform_indices = @transform_5, window_bounds = array<i64: 1, 2, 8, 16>}, {transform_indices = @transform_6, window_bounds = array<i64: 1, 2, 8, 16>}]} {
    %c0 = arith.constant 0 : index
    %c0_0 = arith.constant 0 : index
    %c0_1 = arith.constant 0 : index
    %0 = vector.load %arg2[%c0, %c0_0, %c0_1] : memref<1x8x32xf32, #tpu.memory_space<vmem>>, vector<1x8x32xf32>
    %1 = vector.shape_cast %0 : vector<1x8x32xf32> to vector<8x32xf32>
    %c0_2 = arith.constant 0 : index
    %c0_3 = arith.constant 0 : index
    %2 = vector.load %arg3[%c0_2, %c0_3] : memref<1x32xf32, #tpu.memory_space<vmem>>, vector<1x32xf32>
    %3 = vector.shape_cast %2 : vector<1x32xf32> to vector<32xf32>
    %c0_4 = arith.constant 0 : index
    %c0_5 = arith.constant 0 : index
    %4 = vector.load %arg4[%c0_4, %c0_5] : memref<1x32xf32, #tpu.memory_space<vmem>>, vector<1x32xf32>
    %5 = vector.shape_cast %4 : vector<1x32xf32> to vector<32xf32>
    %cst = arith.constant dense<0.000000e+00> : vector<8xf32>
    %6 = vector.multi_reduction <add>, %1, %cst [1] : vector<8x32xf32> to vector<8xf32>
    %7 = vector.shape_cast %6 : vector<8xf32> to vector<8x1xf32>
    %cst_6 = arith.constant 3.200000e+01 : f32
    %8 = vector.broadcast %cst_6 : f32 to vector<8x1xf32>
    %9 = arith.divf %7, %8 : vector<8x1xf32>
    %10 = vector.broadcast %9 : vector<8x1xf32> to vector<8x32xf32>
    %11 = arith.subf %1, %10 : vector<8x32xf32>
    %12 = arith.mulf %11, %11 : vector<8x32xf32>
    %cst_7 = arith.constant dense<0.000000e+00> : vector<8xf32>
    %13 = vector.multi_reduction <add>, %12, %cst_7 [1] : vector<8x32xf32> to vector<8xf32>
    %14 = vector.shape_cast %13 : vector<8xf32> to vector<8x1xf32>
    %cst_8 = arith.constant 3.200000e+01 : f32
    %15 = vector.broadcast %cst_8 : f32 to vector<8x1xf32>
    %16 = arith.divf %14, %15 : vector<8x1xf32>
    %17 = vector.broadcast %9 : vector<8x1xf32> to vector<8x32xf32>
    %18 = arith.subf %1, %17 : vector<8x32xf32>
    %cst_9 = arith.constant 9.99999974E-6 : f32
    %19 = vector.broadcast %cst_9 : f32 to vector<8x1xf32>
    %20 = arith.addf %16, %19 : vector<8x1xf32>
    %21 = math.rsqrt %20 : vector<8x1xf32>
    %22 = vector.broadcast %21 : vector<8x1xf32> to vector<8x32xf32>
    %23 = arith.mulf %18, %22 : vector<8x32xf32>
    %24 = vector.shape_cast %3 : vector<32xf32> to vector<1x32xf32>
    %25 = vector.broadcast %24 : vector<1x32xf32> to vector<8x32xf32>
    %26 = arith.mulf %23, %25 : vector<8x32xf32>
    %27 = vector.shape_cast %5 : vector<32xf32> to vector<1x32xf32>
    %28 = vector.broadcast %27 : vector<1x32xf32> to vector<8x32xf32>
    %29 = arith.addf %26, %28 : vector<8x32xf32>
    %30 = arith.truncf %29 : vector<8x32xf32> to vector<8x32xbf16>
    %c0_10 = arith.constant 0 : index
    %c0_11 = arith.constant 0 : index
    %31 = vector.load %arg5[%c0_10, %c0_11] : memref<32x96xbf16, #tpu.memory_space<vmem>>, vector<32x96xbf16>
    %cst_12 = arith.constant dense<0.000000e+00> : vector<8x96xf32>
    %32 = tpu.matmul %30, %31, %cst_12 {dimension_numbers = #tpu.dot_dimension_numbers<[1], [0], [0], [1], [0, 0, 1, 1], [], []>} : vector<8x32xbf16>, vector<32x96xbf16>, vector<8x96xf32> -> vector<8x96xf32>
    %33 = vector.extract_strided_slice %32 {offsets = [0, 0], sizes = [8, 32], strides = [1, 1]} : vector<8x96xf32> to vector<8x32xf32>
    %cst_13 = arith.constant 2.500000e-01 : f32
    %34 = vector.broadcast %cst_13 : f32 to vector<8x32xf32>
    %35 = arith.mulf %33, %34 : vector<8x32xf32>
    %36 = arith.truncf %35 : vector<8x32xf32> to vector<8x32xbf16>
    %37 = vector.extract_strided_slice %32 {offsets = [0, 32], sizes = [8, 32], strides = [1, 1]} : vector<8x96xf32> to vector<8x32xf32>
    %38 = arith.truncf %37 : vector<8x32xf32> to vector<8x32xbf16>
    %39 = vector.extract_strided_slice %32 {offsets = [0, 64], sizes = [8, 32], strides = [1, 1]} : vector<8x96xf32> to vector<8x32xf32>
    %40 = arith.truncf %39 : vector<8x32xf32> to vector<8x32xbf16>
    %41 = vector.extract_strided_slice %36 {offsets = [0, 0], sizes = [8, 16], strides = [1, 1]} : vector<8x32xbf16> to vector<8x16xbf16>
    %c0_14 = arith.constant 0 : index
    %c0_15 = arith.constant 0 : index
    %c0_16 = arith.constant 0 : index
    %c0_17 = arith.constant 0 : index
    %42 = vector.load %arg6[%c0_14, %c0_15, %c0_16, %c0_17] : memref<1x2x8x16xbf16, #tpu.memory_space<vmem>>, vector<1x1x8x16xbf16>
    %43 = vector.shape_cast %42 : vector<1x1x8x16xbf16> to vector<8x16xbf16>
    %44 = vector.shape_cast %41 : vector<8x16xbf16> to vector<1x1x8x16xbf16>
    tpu.vector_store %arg6[%c0_14, %c0_15, %c0_16, %c0_17], %44 {strides = array<i32>} : memref<1x2x8x16xbf16, #tpu.memory_space<vmem>>, vector<1x1x8x16xbf16>,
    %45 = vector.extract_strided_slice %38 {offsets = [0, 0], sizes = [8, 16], strides = [1, 1]} : vector<8x32xbf16> to vector<8x16xbf16>
    %c0_18 = arith.constant 0 : index
    %c0_19 = arith.constant 0 : index
    %c0_20 = arith.constant 0 : index
    %c0_21 = arith.constant 0 : index
    %46 = vector.load %arg7[%c0_18, %c0_19, %c0_20, %c0_21] : memref<1x2x8x16xbf16, #tpu.memory_space<vmem>>, vector<1x1x8x16xbf16>
    %47 = vector.shape_cast %46 : vector<1x1x8x16xbf16> to vector<8x16xbf16>
    %48 = vector.shape_cast %45 : vector<8x16xbf16> to vector<1x1x8x16xbf16>
    tpu.vector_store %arg7[%c0_18, %c0_19, %c0_20, %c0_21], %48 {strides = array<i32>} : memref<1x2x8x16xbf16, #tpu.memory_space<vmem>>, vector<1x1x8x16xbf16>,
    %49 = vector.extract_strided_slice %40 {offsets = [0, 0], sizes = [8, 16], strides = [1, 1]} : vector<8x32xbf16> to vector<8x16xbf16>
    %c0_22 = arith.constant 0 : index
    %c0_23 = arith.constant 0 : index
    %c0_24 = arith.constant 0 : index
    %c0_25 = arith.constant 0 : index
    %50 = vector.load %arg8[%c0_22, %c0_23, %c0_24, %c0_25] : memref<1x2x8x16xbf16, #tpu.memory_space<vmem>>, vector<1x1x8x16xbf16>
    %51 = vector.shape_cast %50 : vector<1x1x8x16xbf16> to vector<8x16xbf16>
    %52 = vector.shape_cast %49 : vector<8x16xbf16> to vector<1x1x8x16xbf16>
    tpu.vector_store %arg8[%c0_22, %c0_23, %c0_24, %c0_25], %52 {strides = array<i32>} : memref<1x2x8x16xbf16, #tpu.memory_space<vmem>>, vector<1x1x8x16xbf16>,
    %53 = vector.extract_strided_slice %36 {offsets = [0, 16], sizes = [8, 16], strides = [1, 1]} : vector<8x32xbf16> to vector<8x16xbf16>
    %c0_26 = arith.constant 0 : index
    %c1 = arith.constant 1 : index
    %c0_27 = arith.constant 0 : index
    %c0_28 = arith.constant 0 : index
    %54 = vector.load %arg6[%c0_26, %c1, %c0_27, %c0_28] : memref<1x2x8x16xbf16, #tpu.memory_space<vmem>>, vector<1x1x8x16xbf16>
    %55 = vector.shape_cast %54 : vector<1x1x8x16xbf16> to vector<8x16xbf16>
    %56 = vector.shape_cast %53 : vector<8x16xbf16> to vector<1x1x8x16xbf16>
    tpu.vector_store %arg6[%c0_26, %c1, %c0_27, %c0_28], %56 {strides = array<i32>} : memref<1x2x8x16xbf16, #tpu.memory_space<vmem>>, vector<1x1x8x16xbf16>,
    %57 = vector.extract_strided_slice %38 {offsets = [0, 16], sizes = [8, 16], strides = [1, 1]} : vector<8x32xbf16> to vector<8x16xbf16>
    %c0_29 = arith.constant 0 : index
    %c1_30 = arith.constant 1 : index
    %c0_31 = arith.constant 0 : index
    %c0_32 = arith.constant 0 : index
    %58 = vector.load %arg7[%c0_29, %c1_30, %c0_31, %c0_32] : memref<1x2x8x16xbf16, #tpu.memory_space<vmem>>, vector<1x1x8x16xbf16>
    %59 = vector.shape_cast %58 : vector<1x1x8x16xbf16> to vector<8x16xbf16>
    %60 = vector.shape_cast %57 : vector<8x16xbf16> to vector<1x1x8x16xbf16>
    tpu.vector_store %arg7[%c0_29, %c1_30, %c0_31, %c0_32], %60 {strides = array<i32>} : memref<1x2x8x16xbf16, #tpu.memory_space<vmem>>, vector<1x1x8x16xbf16>,
    %61 = vector.extract_strided_slice %40 {offsets = [0, 16], sizes = [8, 16], strides = [1, 1]} : vector<8x32xbf16> to vector<8x16xbf16>
    %c0_33 = arith.constant 0 : index
    %c1_34 = arith.constant 1 : index
    %c0_35 = arith.constant 0 : index
    %c0_36 = arith.constant 0 : index
    %62 = vector.load %arg8[%c0_33, %c1_34, %c0_35, %c0_36] : memref<1x2x8x16xbf16, #tpu.memory_space<vmem>>, vector<1x1x8x16xbf16>
    %63 = vector.shape_cast %62 : vector<1x1x8x16xbf16> to vector<8x16xbf16>
    %64 = vector.shape_cast %61 : vector<8x16xbf16> to vector<1x1x8x16xbf16>
    tpu.vector_store %arg8[%c0_33, %c1_34, %c0_35, %c0_36], %64 {strides = array<i32>} : memref<1x2x8x16xbf16, #tpu.memory_space<vmem>>, vector<1x1x8x16xbf16>,
    return
  }
  func.func @transform_0(%arg0: i32, %arg1: i32) -> (i32, i32, i32) {
    %c0_i32 = arith.constant 0 : i32
    %c0_i32_0 = arith.constant 0 : i32
    return %arg0, %arg1, %c0_i32 : i32, i32, i32
  }
  func.func @transform_1(%arg0: i32, %arg1: i32) -> (i32, i32) {
    %c0_i32 = arith.constant 0 : i32
    %c0_i32_0 = arith.constant 0 : i32
    %c0_i32_1 = arith.constant 0 : i32
    return %c0_i32, %c0_i32_0 : i32, i32
  }
  func.func @transform_2(%arg0: i32, %arg1: i32) -> (i32, i32) {
    %c0_i32 = arith.constant 0 : i32
    %c0_i32_0 = arith.constant 0 : i32
    %c0_i32_1 = arith.constant 0 : i32
    return %c0_i32, %c0_i32_0 : i32, i32
  }
  func.func @transform_3(%arg0: i32, %arg1: i32) -> (i32, i32) {
    %c0_i32 = arith.constant 0 : i32
    %c0_i32_0 = arith.constant 0 : i32
    %c0_i32_1 = arith.constant 0 : i32
    return %c0_i32, %c0_i32_0 : i32, i32
  }
  func.func @transform_4(%arg0: i32, %arg1: i32) -> (i32, i32, i32, i32) {
    %c0_i32 = arith.constant 0 : i32
    %c0_i32_0 = arith.constant 0 : i32
    %c0_i32_1 = arith.constant 0 : i32
    return %arg0, %c0_i32, %arg1, %c0_i32_0 : i32, i32, i32, i32
  }
  func.func @transform_5(%arg0: i32, %arg1: i32) -> (i32, i32, i32, i32) {
    %c0_i32 = arith.constant 0 : i32
    %c0_i32_0 = arith.constant 0 : i32
    %c0_i32_1 = arith.constant 0 : i32
    return %arg0, %c0_i32, %arg1, %c0_i32_0 : i32, i32, i32, i32
  }
  func.func @transform_6(%arg0: i32, %arg1: i32) -> (i32, i32, i32, i32) {
    %c0_i32 = arith.constant 0 : i32
    %c0_i32_0 = arith.constant 0 : i32
    %c0_i32_1 = arith.constant 0 : i32
    return %arg0, %c0_i32, %arg1, %c0_i32_0 : i32, i32, i32, i32
  }
}

module attributes {stable_mosaic.version = 11 : i64} {
  func.func @_qkv_kernel(%arg0: i32, %arg1: i32, %arg2: memref<1x8x32xf32, #tpu.memory_space<vmem>>, %arg3: memref<1x32xf32, #tpu.memory_space<vmem>>, %arg4: memref<1x32xf32, #tpu.memory_space<vmem>>, %arg5: memref<32x96xbf16, #tpu.memory_space<vmem>>, %arg6: memref<1x2x8x16xbf16, #tpu.memory_space<vmem>>, %arg7: memref<1x2x8x16xbf16, #tpu.memory_space<vmem>>, %arg8: memref<1x2x8x16xbf16, #tpu.memory_space<vmem>>) attributes {dimension_semantics = [#tpu.dimension_semantics<parallel>, #tpu.dimension_semantics<parallel>], iteration_bounds = array<i64: 2, 2>, scalar_prefetch = 0 : i64, scratch_operands = 0 : i64, tpu.core_type = #tpu.core_type<tc>, window_params = [{transform_indices = @transform_0, window_bounds = array<i64: 1, 8, 32>}, {pipeline_mode = #tpu.pipeline_mode<synchronous>, transform_indices = @transform_1, window_bounds = array<i64: 1, 32>}, {pipeline_mode = #tpu.pipeline_mode<synchronous>, transform_indices = @transform_2, window_bounds = array<i64: 1, 32>}, {pipeline_mode = #tpu.pipeline_mode<synchronous>, transform_indices = @transform_3, window_bounds = array<i64: 32, 96>}, {transform_indices = @transform_4, window_bounds = array<i64: 1, 2, 8, 16>}, {transform_indices = @transform_5, window_bounds = array<i64: 1, 2, 8, 16>}, {transform_indices = @transform_6, window_bounds = array<i64: 1, 2, 8, 16>}]} {
    %c0 = arith.constant 0 : index
    %c0_0 = arith.constant 0 : index
    %c0_1 = arith.constant 0 : index
    %0 = vector.load %arg2[%c0, %c0_0, %c0_1] : memref<1x8x32xf32, #tpu.memory_space<vmem>>, vector<1x8x32xf32>
    %1 = vector.shape_cast %0 : vector<1x8x32xf32> to vector<8x32xf32>
    %c0_2 = arith.constant 0 : index
    %c0_3 = arith.constant 0 : index
    %2 = vector.load %arg3[%c0_2, %c0_3] : memref<1x32xf32, #tpu.memory_space<vmem>>, vector<1x32xf32>
    %3 = vector.shape_cast %2 : vector<1x32xf32> to vector<32xf32>
    %c0_4 = arith.constant 0 : index
    %c0_5 = arith.constant 0 : index
    %4 = vector.load %arg4[%c0_4, %c0_5] : memref<1x32xf32, #tpu.memory_space<vmem>>, vector<1x32xf32>
    %5 = vector.shape_cast %4 : vector<1x32xf32> to vector<32xf32>
    %cst = arith.constant dense<0.000000e+00> : vector<8xf32>
    %6 = vector.multi_reduction <add>, %1, %cst [1] : vector<8x32xf32> to vector<8xf32>
    %7 = vector.shape_cast %6 : vector<8xf32> to vector<8x1xf32>
    %cst_6 = arith.constant 3.200000e+01 : f32
    %8 = vector.broadcast %cst_6 : f32 to vector<8x1xf32>
    %9 = arith.divf %7, %8 : vector<8x1xf32>
    %10 = vector.broadcast %9 : vector<8x1xf32> to vector<8x32xf32>
    %11 = arith.subf %1, %10 : vector<8x32xf32>
    %12 = arith.mulf %11, %11 : vector<8x32xf32>
    %cst_7 = arith.constant dense<0.000000e+00> : vector<8xf32>
    %13 = vector.multi_reduction <add>, %12, %cst_7 [1] : vector<8x32xf32> to vector<8xf32>
    %14 = vector.shape_cast %13 : vector<8xf32> to vector<8x1xf32>
    %cst_8 = arith.constant 3.200000e+01 : f32
    %15 = vector.broadcast %cst_8 : f32 to vector<8x1xf32>
    %16 = arith.divf %14, %15 : vector<8x1xf32>
    %17 = vector.broadcast %9 : vector<8x1xf32> to vector<8x32xf32>
    %18 = arith.subf %1, %17 : vector<8x32xf32>
    %cst_9 = arith.constant 9.99999974E-6 : f32
    %19 = vector.broadcast %cst_9 : f32 to vector<8x1xf32>
    %20 = arith.addf %16, %19 : vector<8x1xf32>
    %21 = math.rsqrt %20 : vector<8x1xf32>
    %22 = vector.broadcast %21 : vector<8x1xf32> to vector<8x32xf32>
    %23 = arith.mulf %18, %22 : vector<8x32xf32>
    %24 = vector.shape_cast %3 : vector<32xf32> to vector<1x32xf32>
    %25 = vector.broadcast %24 : vector<1x32xf32> to vector<8x32xf32>
    %26 = arith.mulf %23, %25 : vector<8x32xf32>
    %27 = vector.shape_cast %5 : vector<32xf32> to vector<1x32xf32>
    %28 = vector.broadcast %27 : vector<1x32xf32> to vector<8x32xf32>
    %29 = arith.addf %26, %28 : vector<8x32xf32>
    %30 = arith.truncf %29 : vector<8x32xf32> to vector<8x32xbf16>
    %c0_10 = arith.constant 0 : index
    %c0_11 = arith.constant 0 : index
    %31 = vector.load %arg5[%c0_10, %c0_11] : memref<32x96xbf16, #tpu.memory_space<vmem>>, vector<32x96xbf16>
    %cst_12 = arith.constant dense<0.000000e+00> : vector<8x96xf32>
    %32 = tpu.matmul %30, %31, %cst_12 {dimension_numbers = #tpu.dot_dimension_numbers<[1], [0], [0], [1], [0, 0, 1, 1], [], []>} : vector<8x32xbf16>, vector<32x96xbf16>, vector<8x96xf32> -> vector<8x96xf32>
    %33 = vector.extract_strided_slice %32 {offsets = [0, 0], sizes = [8, 32], strides = [1, 1]} : vector<8x96xf32> to vector<8x32xf32>
    %cst_13 = arith.constant 2.500000e-01 : f32
    %34 = vector.broadcast %cst_13 : f32 to vector<8x32xf32>
    %35 = arith.mulf %33, %34 : vector<8x32xf32>
    %36 = arith.truncf %35 : vector<8x32xf32> to vector<8x32xbf16>
    %37 = vector.extract_strided_slice %32 {offsets = [0, 32], sizes = [8, 32], strides = [1, 1]} : vector<8x96xf32> to vector<8x32xf32>
    %38 = arith.truncf %37 : vector<8x32xf32> to vector<8x32xbf16>
    %39 = vector.extract_strided_slice %32 {offsets = [0, 64], sizes = [8, 32], strides = [1, 1]} : vector<8x96xf32> to vector<8x32xf32>
    %40 = arith.truncf %39 : vector<8x32xf32> to vector<8x32xbf16>
    %41 = vector.extract_strided_slice %36 {offsets = [0, 0], sizes = [8, 16], strides = [1, 1]} : vector<8x32xbf16> to vector<8x16xbf16>
    %c0_14 = arith.constant 0 : index
    %c0_15 = arith.constant 0 : index
    %c0_16 = arith.constant 0 : index
    %c0_17 = arith.constant 0 : index
    %42 = vector.load %arg6[%c0_14, %c0_15, %c0_16, %c0_17] : memref<1x2x8x16xbf16, #tpu.memory_space<vmem>>, vector<1x1x8x16xbf16>
    %43 = vector.shape_cast %42 : vector<1x1x8x16xbf16> to vector<8x16xbf16>
    %44 = vector.shape_cast %41 : vector<8x16xbf16> to vector<1x1x8x16xbf16>
    tpu.vector_store %arg6[%c0_14, %c0_15, %c0_16, %c0_17], %44 {strides = array<i32>} : memref<1x2x8x16xbf16, #tpu.memory_space<vmem>>, vector<1x1x8x16xbf16>,
    %45 = vector.extract_strided_slice %38 {offsets = [0, 0], sizes = [8, 16], strides = [1, 1]} : vector<8x32xbf16> to vector<8x16xbf16>
    %c0_18 = arith.constant 0 : index
    %c0_19 = arith.constant 0 : index
    %c0_20 = arith.constant 0 : index
    %c0_21 = arith.constant 0 : index
    %46 = vector.load %arg7[%c0_18, %c0_19, %c0_20, %c0_21] : memref<1x2x8x16xbf16, #tpu.memory_space<vmem>>, vector<1x1x8x16xbf16>
    %47 = vector.shape_cast %46 : vector<1x1x8x16xbf16> to vector<8x16xbf16>
    %48 = vector.shape_cast %45 : vector<8x16xbf16> to vector<1x1x8x16xbf16>
    tpu.vector_store %arg7[%c0_18, %c0_19, %c0_20, %c0_21], %48 {strides = array<i32>} : memref<1x2x8x16xbf16, #tpu.memory_space<vmem>>, vector<1x1x8x16xbf16>,
    %49 = vector.extract_strided_slice %40 {offsets = [0, 0], sizes = [8, 16], strides = [1, 1]} : vector<8x32xbf16> to vector<8x16xbf16>
    %c0_22 = arith.constant 0 : index
    %c0_23 = arith.constant 0 : index
    %c0_24 = arith.constant 0 : index
    %c0_25 = arith.constant 0 : index
    %50 = vector.load %arg8[%c0_22, %c0_23, %c0_24, %c0_25] : memref<1x2x8x16xbf16, #tpu.memory_space<vmem>>, vector<1x1x8x16xbf16>
    %51 = vector.shape_cast %50 : vector<1x1x8x16xbf16> to vector<8x16xbf16>
    %52 = vector.shape_cast %49 : vector<8x16xbf16> to vector<1x1x8x16xbf16>
    tpu.vector_store %arg8[%c0_22, %c0_23, %c0_24, %c0_25], %52 {strides = array<i32>} : memref<1x2x8x16xbf16, #tpu.memory_space<vmem>>, vector<1x1x8x16xbf16>,
    %53 = vector.extract_strided_slice %36 {offsets = [0, 16], sizes = [8, 16], strides = [1, 1]} : vector<8x32xbf16> to vector<8x16xbf16>
    %c0_26 = arith.constant 0 : index
    %c1 = arith.constant 1 : index
    %c0_27 = arith.constant 0 : index
    %c0_28 = arith.constant 0 : index
    %54 = vector.load %arg6[%c0_26, %c1, %c0_27, %c0_28] : memref<1x2x8x16xbf16, #tpu.memory_space<vmem>>, vector<1x1x8x16xbf16>
    %55 = vector.shape_cast %54 : vector<1x1x8x16xbf16> to vector<8x16xbf16>
    %56 = vector.shape_cast %53 : vector<8x16xbf16> to vector<1x1x8x16xbf16>
    tpu.vector_store %arg6[%c0_26, %c1, %c0_27, %c0_28], %56 {strides = array<i32>} : memref<1x2x8x16xbf16, #tpu.memory_space<vmem>>, vector<1x1x8x16xbf16>,
    %57 = vector.extract_strided_slice %38 {offsets = [0, 16], sizes = [8, 16], strides = [1, 1]} : vector<8x32xbf16> to vector<8x16xbf16>
    %c0_29 = arith.constant 0 : index
    %c1_30 = arith.constant 1 : index
    %c0_31 = arith.constant 0 : index
    %c0_32 = arith.constant 0 : index
    %58 = vector.load %arg7[%c0_29, %c1_30, %c0_31, %c0_32] : memref<1x2x8x16xbf16, #tpu.memory_space<vmem>>, vector<1x1x8x16xbf16>
    %59 = vector.shape_cast %58 : vector<1x1x8x16xbf16> to vector<8x16xbf16>
    %60 = vector.shape_cast %57 : vector<8x16xbf16> to vector<1x1x8x16xbf16>
    tpu.vector_store %arg7[%c0_29, %c1_30, %c0_31, %c0_32], %60 {strides = array<i32>} : memref<1x2x8x16xbf16, #tpu.memory_space<vmem>>, vector<1x1x8x16xbf16>,
    %61 = vector.extract_strided_slice %40 {offsets = [0, 16], sizes = [8, 16], strides = [1, 1]} : vector<8x32xbf16> to vector<8x16xbf16>
    %c0_33 = arith.constant 0 : index
    %c1_34 = arith.constant 1 : index
    %c0_35 = arith.constant 0 : index
    %c0_36 = arith.constant 0 : index
    %62 = vector.load %arg8[%c0_33, %c1_34, %c0_35, %c0_36] : memref<1x2x8x16xbf16, #tpu.memory_space<vmem>>, vector<1x1x8x16xbf16>
    %63 = vector.shape_cast %62 : vector<1x1x8x16xbf16> to vector<8x16xbf16>
    %64 = vector.shape_cast %61 : vector<8x16xbf16> to vector<1x1x8x16xbf16>
    tpu.vector_store %arg8[%c0_33, %c1_34, %c0_35, %c0_36], %64 {strides = array<i32>} : memref<1x2x8x16xbf16, #tpu.memory_space<vmem>>, vector<1x1x8x16xbf16>,
    return
  }
  func.func @transform_0(%arg0: i32, %arg1: i32) -> (i32, i32, i32) {
    %c0_i32 = arith.constant 0 : i32
    %c0_i32_0 = arith.constant 0 : i32
    return %arg0, %arg1, %c0_i32 : i32, i32, i32
  }
  func.func @transform_1(%arg0: i32, %arg1: i32) -> (i32, i32) {
    %c0_i32 = arith.constant 0 : i32
    %c0_i32_0 = arith.constant 0 : i32
    %c0_i32_1 = arith.constant 0 : i32
    return %c0_i32, %c0_i32_0 : i32, i32
  }
  func.func @transform_2(%arg0: i32, %arg1: i32) -> (i32, i32) {
    %c0_i32 = arith.constant 0 : i32
    %c0_i32_0 = arith.constant 0 : i32
    %c0_i32_1 = arith.constant 0 : i32
    return %c0_i32, %c0_i32_0 : i32, i32
  }
  func.func @transform_3(%arg0: i32, %arg1: i32) -> (i32, i32) {
    %c0_i32 = arith.constant 0 : i32
    %c0_i32_0 = arith.constant 0 : i32
    %c0_i32_1 = arith.constant 0 : i32
    return %c0_i32, %c0_i32_0 : i32, i32
  }
  func.func @transform_4(%arg0: i32, %arg1: i32) -> (i32, i32, i32, i32) {
    %c0_i32 = arith.constant 0 : i32
    %c0_i32_0 = arith.constant 0 : i32
    %c0_i32_1 = arith.constant 0 : i32
    return %arg0, %c0_i32, %arg1, %c0_i32_0 : i32, i32, i32, i32
  }
  func.func @transform_5(%arg0: i32, %arg1: i32) -> (i32, i32, i32, i32) {
    %c0_i32 = arith.constant 0 : i32
    %c0_i32_0 = arith.constant 0 : i32
    %c0_i32_1 = arith.constant 0 : i32
    return %arg0, %c0_i32, %arg1, %c0_i32_0 : i32, i32, i32, i32
  }
  func.func @transform_6(%arg0: i32, %arg1: i32) -> (i32, i32, i32, i32) {
    %c0_i32 = arith.constant 0 : i32
    %c0_i32_0 = arith.constant 0 : i32
    %c0_i32_1 = arith.constant 0 : i32
    return %arg0, %c0_i32, %arg1, %c0_i32_0 : i32, i32, i32, i32
  }
}

</mosaic_0001>

<bundles_post_ra>
// kernel: tpu_custom_call.1
= control target key start
LH: loop header
LB: loop body
LE: loop exit
PB: predicated region body
PF: predicated region fallthrough
CT: control target
= control target key end

     0   :  { %s1455_s0 = inlined_call_operand.hbm [shape: f32[2,16,32], index: 0, kind: input, shape index: {}]   ;;  %s1456_s1 = inlined_call_operand.vmem [shape: f32[1,32], index: 1, kind: input, shape index: {}]   ;;  %s1457_s2 = inlined_call_operand.vmem [shape: f32[1,32], index: 2, kind: input, shape index: {}]   ;;  %s1458_s3 = inlined_call_operand.hbm [shape: bf16[32,96], index: 3, kind: input, shape index: {}]   ;;  %s1459_s4 = inlined_call_operand.hbm [shape: bf16[2,2,16,16], index: 4, kind: output, shape index: {0}]   ;;  %s1460_s5 = inlined_call_operand.hbm [shape: bf16[2,2,16,16], index: 5, kind: output, shape index: {1}]   ;;  %s1461_s6 = inlined_call_operand.hbm [shape: bf16[2,2,16,16], index: 6, kind: output, shape index: {2}]  }
   0x1   :  { %1472 = sst [smem:[#allocation18_spill]] %s1455_s0 }
   0x2   :  { %1473 = sst [smem:[#allocation19_spill]] %s1456_s1 }
   0x3   :  { %1474 = sst [smem:[#allocation20_spill]] %s1458_s3 }
   0x4   :  { %1475 = sst [smem:[#allocation21_spill]] %s1459_s4 }
   0x5   :  { %1476 = sst [smem:[#allocation22_spill]] %s1460_s5 }
   0x6   :  { %1477 = sst [smem:[#allocation23_spill]] %s1461_s6 }
   0x7   :  { %12 = vsyncpa [#allocation3], 0 }
   0x8   :  { %14 = vsyncpa [#allocation3 + $0x1], 0 }
   0x9   :  { %15 = vsyncpa [#allocation6], 0 }
   0xa   :  { %16 = vsyncpa [#allocation4], 0 }
   0xb   :  { %18 = vsyncpa [#allocation4 + $0x1], 0 }
   0xc   :  { %19 = vsyncpa [#allocation9], 0 }
   0xd   :  { %21 = vsyncpa [#allocation9 + $0x1], 0  ;;  %s1106_s21 = smov 0   ;;  %s1108_s22 = smov 0  }
   0xe   :  { %s1110_s23 = smov 0   ;;  %s1112_s24 = smov 0  }
   0xf   :  { %s1114_s25 = smov 0   ;;  %s1116_s26 = smov 0  }
  0x10   :  { %s1118_s27 = smov 0   ;;  %s1120_s28 = smov 0  }
  0x11 LB: > { %1478 = sst [smem:[#allocation15_spill]] %s1025_s21  ;;  %s1147_s29 = sadd.s32 4294967295, %s1053_s28   ;;  %s1053_s28 = sphi %s1120_s28, %s27_s28   ;;  %s1049_s27 = sphi %s1118_s27, %s1510_s27   ;;  %s1045_s26 = sphi %s1116_s26, %s1509_s26   ;;  %s1041_s25 = sphi %s1114_s25, %s1508_s25   ;;  %s1037_s24 = sphi %s1112_s24, %s1507_s24   ;;  %s1033_s23 = sphi %s1110_s23, %s1506_s23   ;;  %s1029_s22 = sphi %s1108_s22, %s1505_s22   ;;  %s1025_s21 = sphi %s1106_s21, %s1504_s21  }
  0x12   : > { %s1465_s30 = sadd.s32 4294967294, %s1053_s28   ;;  %p61_p0 = scmp.ne.s32.totalorder %s1029_s22, %s1025_s21 }
  0x13   : > { %p1462_p1 = scmp.eq.s32.totalorder %s1147_s29, 0  ;;  %p156_p3 = scmp.eq.s32.totalorder %s1465_s30, 3 }
  0x14   : > { %p673_p5 = scmp.ge.s32.totalorder %s1053_s28, 1  ;;  %p219_p7 = scmp.lt.s32.totalorder %s1053_s28, 5 }
  0x15   : > { %p1158_p4 = por %p1462_p1, %p61_p0  ;;  %p1163_p6 = por %p156_p3, %p61_p0 }
  0x16   : > { %p1168_p8 = pnand %p673_p5, %p219_p7  ;;  %s1055_s10 = smov [#allocation5]  }
  0x17   : > { %s1479_s7 = scalar_select %p1158_p4, 1, 0 }
  0x18   : > { %s1480_s8 = scalar_select %p1163_p6, 1, 0 }
  0x19   : > { %s1482_s9 = scalar_select %p1168_p8, 1, 0 }
  0x1a   : > { %1481 = sst [smem:[#allocation16_spill]] %s1480_s8  ;;  %s237_s11 = sshll.u32 %s1055_s10, 4  ;;  %s238_s11 = int_to_ptr.vmem [resolvable:$true] %s237_s11 }
  0x1b   : > { %p731_p9 = pneg %p1168_p8  ;;  %s1484_s3 = sld [smem:[#allocation20_spill]] }
  0x1d   : > { %p1176_p10 = pnand %p731_p9, %p1462_p1 }
  0x1f   : > { %p835_p12 = pneg %p1176_p10 }
  0x21   : > { %s833_s15 = scalar_lea.hbm %s1484_s3, 256 }
  0x22   : > { %p834_p11 = scmp.ne.s32.totalorder %s1484_s3, %s833_s15  ;;  %p840_p3 = scmp.lt.u32.totalorder %s833_s15, %s1484_s3 }
  0x24   : > { %p836_p13 = pnand %p835_p12, %p834_p11 }
  0x26   : > { %p837_p0 = pneg %p836_p13 }
  0x28   : > { %p842_p5 = pnand %p840_p3, %p837_p0 }
  0x2a   : > { %845 = shalt.err (!%p842_p5)
}
  0x2b   : > { %s846_s20 = scalar_lea.vmem %s238_s11, 256  ;;  %p854_p2 = scmp.lt.s32.totalorder %s238_s11, %s238_s11 }
  0x2c   : > { %p847_p7 = scmp.ne.s32.totalorder %s238_s11, %s846_s20  ;;  %p855_p6 = scmp.lt.s32.totalorder %s846_s20, %s846_s20 }
  0x2e   : > { %p849_p9 = pnand %p847_p7, %p835_p12  ;;  %p856_p4 = por %p855_p6, %p854_p2 }
  0x30   : > { %p850_p1 = pneg %p849_p9 }
  0x32   : > { %p857_p8 = pnand %p856_p4, %p850_p1 }
  0x34   : > { %860 = shalt.err (!%p857_p8)
}
  0x35   : > { %s1056_s10 = smov 64   ;;  %s1057_s13 = smov 4  }
  0x36   : > { %734 = dma.hbm_to_vmem [thread:$0]  (!%p1176_p10), %s1484_s3, 256, %s238_s11, [#allocation6], %s1056_s10, %s1056_s10, %s1057_s13  }
  0x37   : > { %s36_s16 = sadd.s32 1, %s1045_s26  ;;  %s39_s17 = sadd.s32 1, %s1049_s27 }
  0x38   : > { %p37_p1 = scmp.ge.s32.totalorder %s36_s16, 2  ;;  %s48_s18 = sadd.s32 1, %s1033_s23 }
  0x39   : > { %p55_p2 = scmp.ne.s32.totalorder %s1033_s23, %s1029_s22  ;;  %p56_p4 = scmp.eq.s32.totalorder %s1053_s28, 0 }
  0x3a   : > { %s1512_s16 = smov (%p37_p1, %s36_s16), 0  ;;  %s1514_s17 = smov (!%p37_p1, %s39_s17), %s1049_s27 }
  0x3b   : > { %1485 = sst [smem:[#allocation17_spill]] %s1512_s16  ;;  %s44_s19 = ssub.s32 %s1045_s26, %s1512_s16 }
  0x3c   : > { %p41_p6 = scmp.ge.s32.totalorder %s1514_s17, 2  ;;  %p1486_p8 = scmp.eq.s32.totalorder %s1147_s29, 3 }
  0x3d   : > { %p1213_p10 = por %p56_p4, %p55_p2  ;;  %p750_p12 = scmp.lt.s32.totalorder %s1053_s28, 4 }
  0x3e   : > { %p1209_p11 = por %p1486_p8, %p55_p2  ;;  %s1516_s17 = smov (%p41_p6, %s1514_s17), 0 }
  0x3f   : > { %s251_s20 = sand.u32 1, %s1033_s23   ;;  %s677_s10 = sshll.u32 %s1049_s27, 1 }
  0x40   : > { %s43_s13 = ssub.s32 %s1049_s27, %s1516_s17  ;;  %s676_s15 = sshll.u32 %s251_s20, 3 }
  0x41   : > { %s45_s14 = sor.u32 %s44_s19, %s43_s13  ;;  %s260_s30 = sadd.s32 %s1045_s26, %s677_s10 }
  0x42   : > { %p46_p13 = scmp.eq.s32.totalorder %s45_s14, 0  ;;  %s255_s3 = scalar_lea.vmem [#allocation2], %s676_s15 }
  0x43   : > { %s264_s16 = sshll.u32 %s255_s3, 4  ;;  %s678_s21 = sshll.u32 %s260_s30, 7  ;;  %s1228_s16 = int_to_ptr.vmem [resolvable:$true] %s264_s16 }
  0x44   : > { %s1226_s8 = scalar_select %p46_p13, %s1033_s23, %s48_s18  }
  0x45   : > { %s1489_s0 = sld [smem:[#allocation18_spill]]  ;;  %p1239_p0 = pnand %p750_p12, %p1213_p10 }
  0x46   : > { %s252_s3 = scalar_lea.sflag [#allocation3], %s251_s20 }
  0x47   : > { %p863_p5 = pneg %p1239_p0 }
  0x4b   : > { %s1233_s5 = scalar_lea.hbm %s1489_s0, %s678_s21  ;;  %s866_s21 = scalar_lea.hbm %s1489_s0, 512 }
  0x4c   : > { %s861_s30 = scalar_lea.hbm %s1233_s5, 128  ;;  %p867_p1 = scmp.lt.u32.totalorder %s1233_s5, %s1489_s0 }
  0x4d   : > { %p862_p3 = scmp.ne.s32.totalorder %s1233_s5, %s861_s30  ;;  %p868_p2 = scmp.lt.u32.totalorder %s866_s21, %s861_s30 }
  0x4e   : > { %p870_p6 = scmp.lt.u32.totalorder %s861_s30, %s1233_s5 }
  0x4f   : > { %p864_p7 = pnand %p863_p5, %p862_p3  ;;  %p869_p4 = por %p868_p2, %p867_p1 }
  0x51   : > { %p865_p9 = pneg %p864_p7  ;;  %p871_p8 = por %p870_p6, %p869_p4 }
  0x53   : > { %p872_p10 = pnand %p871_p8, %p865_p9 }
  0x55   : > { %875 = shalt.err (!%p872_p10)
}
  0x56   : > { %s876_s20 = scalar_lea.vmem %s1228_s16, 128  ;;  %s1058_s10 = smov [#allocation2]  }
  0x57   : > { %p877_p12 = scmp.ne.s32.totalorder %s1228_s16, %s876_s20  ;;  %s881_s13 = sshll.u32 %s1058_s10, 4  ;;  %s882_s13 = int_to_ptr.vmem [resolvable:$false] %s881_s13 }
  0x58   : > { %s883_s14 = scalar_lea.vmem %s882_s13, 256  ;;  %p884_p7 = scmp.lt.s32.totalorder %s1228_s16, %s882_s13 }
  0x59   : > { %p879_p13 = pnand %p877_p12, %p863_p5  ;;  %p885_p1 = scmp.lt.s32.totalorder %s883_s14, %s876_s20 }
  0x5b   : > { %p880_p3 = pneg %p879_p13  ;;  %p886_p2 = por %p885_p1, %p884_p7 }
  0x5d   : > { %p887_p4 = pnand %p886_p2, %p880_p3 }
  0x5f   : > { %890 = shalt.err (!%p887_p4)
}
  0x60   : > { %738 = dma.hbm_to_vmem [thread:$0]  (!%p1239_p0), %s1233_s5, 128, %s1228_s16, %s252_s3  }
  0x61   : > { %p1491_p9 = scmp.ne.s32.totalorder %s1482_s9, 0 }
  0x62   : > { %s1271_s15 = sand.u32 (!%p1491_p9), 1, %s1029_s22   ;;  %p1492_p5 = scmp.ne.s32.totalorder (!%p1491_p9), %s1479_s7, 0 }
  0x63   : > { %273 = sbr.rel (%p1491_p9) target bundleno = 821 (0x335), region = 36  ;;  %s1274_s30 = sshll.u32 (!%p1491_p9), %s1271_s15, 3 }
  0x64   : > { %s276_s4 = scalar_lea.sflag (!%p1491_p9), [#allocation3], %s1271_s15  ;;  %s279_s6 = scalar_lea.vmem (!%p1491_p9), [#allocation2], %s1274_s30 }
  0x6a   : > { %1008 = dma.done.wait (%p1492_p5), %s276_s4, 128  }
  0x6b   : > { %1010 = vsyncadd (%p1492_p5), %s276_s4, 4294967168  ;;  %p1493_p0 = scmp.eq.s32.totalorder %s1147_s29, 0 }
  0x6d   : > { %1012 = dma.done.wait (%p1493_p0), [#allocation6], 256   ;;  %p1494_p6 = pmov %p1493_p0 }
  0x6e   : > { %vm326_vm0 = vcmask 261120   ;;  %v323_v0 = vld [vmem:[%s279_s6] sm:$0xff]  ;;  %v829_v7 = vld [vmem:[#allocation5] sm:$0xff]   ;;  %v1059_v8 = vmov 0.0   ;;  %vm1060_vm1 = vmmov 0   ;;  %v830_v9 = vld [vmem:[#allocation5 + $0x8] sm:$0xff]  }
  0x6f   : > { %1014 = vsyncadd (%p1494_p6), [#allocation6], 4294967040  ;;  %v327_v1 = vsel %vm326_vm0, %v323_v0, 0.0  ;;  %711 = vmatprep.subr.bf16.mxu0 %v1059_v8  ;;  %715 = vmatprep.mubr.msk.bf16.mxu0 %vm1060_vm1, %v1059_v8  ;;  %s1495_s1 = sld [smem:[#allocation19_spill]]  ;;  %v686_v16 = vld [vmem:[%s1457_s2] ss:$0 sm:$0xff] }
  0x70   : > { %328 = vadd.xlane.f32.xlu0 %v327_v1  ;;  %712 = vmatpush3.bf16.msra.mxu0 %v829_v7  ;;  %vm418_vm2 = vcmask 125952   ;;  %s1061_s19 = smov 64   ;;  %s1062_s3 = smov 96  }
  0x71   : > { %713 = vmatprep.subr.bf16.mxu0 %v1059_v8  ;;  %s1297_s21 = scalar_lea.vmem [#allocation7], %s1274_s30  ;;  %s1063_s18 = smov 80  }
  0x72   : > { %s1064_s11 = smov 112   ;;  %s1065_s20 = smov 48  }
  0x73   : > { %s698_s10 = sshll.u32 %s1041_s25, 2  ;;  %s314_s14 = scalar_lea.vmem [#allocation8], %s1274_s30 }
  0x74   : > { %714 = vmatpush3.bf16.msra.mxu0 %v830_v9  ;;  %s471_s13 = sadd.s32 %s1037_s24, %s698_s10  ;;  %s491_s4 = sshll.u32 %s314_s14, 4  ;;  %s1312_s4 = int_to_ptr.vmem [resolvable:$true] %s491_s4 }
  0x75   : > { %v685_v14 = vld [vmem:[%s1495_s1] ss:$0 sm:$0xff]  ;;  %s454_s6 = sand.u32 1, %s1147_s29   ;;  %s1305_s5 = sshll.u32 %s471_s13, 6 }
  0x76   : > { %s1308_s7 = scalar_lea.vmem [#allocation10], %s1274_s30  ;;  %s474_s24 = sshll.u32 %s1297_s21, 4  ;;  %s1323_s24 = int_to_ptr.vmem [resolvable:$true] %s474_s24 }
  0x77   : > { %s1496_s9 = sld [smem:[#allocation22_spill]]  ;;  %s1325_s30 = scalar_lea.sflag [#allocation9], %s454_s6 }
  0x7d   : > { %s1320_s16 = scalar_lea.hbm %s1496_s9, %s1305_s5 }
  0xfd   : > { %v329_v2 = vpop.xlane.xlu0 %328 }
  0xfe   : > { %v331_v3 = vmul.f32 0.03125, %v329_v2 }
 0x100   : > { %v332_v4 = vsub.f32 %v323_v0, %v331_v3 }
 0x102   : > { %v333_v5 = vmul.f32 %v332_v4, %v332_v4 }
 0x104   : > { %v334_v6 = vsel %vm326_vm0, %v333_v5, 0.0 }
 0x105   : > { %335 = vadd.xlane.f32.xlu0 %v334_v6 }
 0x192   : > { %v336_v10 = vpop.xlane.xlu0 %335 }
 0x193   : > { %v337_v11 = vmul.f32 0.03125, %v336_v10 }
 0x195   : > { %v338_v12 = vadd.f32 1e-05, %v337_v11 }
 0x197   : > { %831 = vrsqrt.f32 %v338_v12 }
 0x1a1   : > { %v832_v13 = vpop.eup %831 }
 0x1a2   : > { %v340_v15 = vmul.f32 %v832_v13, %v332_v4 }
 0x1a4   : > { %v347_v17 = vmul.f32 %v685_v14, %v340_v15 }
 0x1a6   : > { %v354_v18 = vadd.f32 %v686_v16, %v347_v17 }
 0x1a8   : > { %v355_v19 = vpack.c.bf16 %v354_v18, %v354_v18 }
 0x1aa   : > { %716 = vmatmul.mubr.msk.bf16.vlgmr.msra.gmra.mrb[0].mxu0 %vm326_vm0, %v355_v19 }
 0x27d   : > { %v409_v20 = vpop.f32.mrb[0].mxu0 }
 0x27e   : > { %v415_v21 = vmul.f32 0.25, %v409_v20  ;;  %v706_v22 = vpack.c.bf16 %v409_v20, %v409_v20  ;;  %v717_v23 = vpop.f32.mrb[1].mxu0 }
 0x27f   : > { %v412_v24 = vpop.f32.mrb[2].mxu0 }
 0x280   : > { %v416_v25 = vpack.c.bf16 %v415_v21, %v415_v21  ;;  %427 = vrot.lane.b32.xlu0 %v706_v22, %s1061_s19  ;;  %423 = vrot.lane.b32.xlu1 %v706_v22, %s1062_s3  ;;  %v718_v26 = vpop.f32.mrb[3].mxu0  ;;  %s891_s3 = scalar_lea.vmem %s1312_s4, 128 }
 0x281   : > { %p892_p8 = scmp.ne.s32.totalorder %s1312_s4, %s891_s3 }
 0x282   : > { %419 = vst.msk [vmem:[%s1297_s21] sm:$0xf] %vm418_vm2, %v416_v25 }
 0x283   : > { %p893_p10 = pnand %p892_p8, %p1209_p11 }
 0x284   : > { %439 = vrot.lane.b32.xlu1 %v706_v22, %s1063_s18  ;;  %s1066_s18 = smov [#allocation8]  }
 0x285   : > { %p894_p12 = pneg %p893_p10 }
 0x288   : > { %434 = vrot.lane.b32.xlu1 %v416_v25, %s1064_s11  ;;  %s895_s11 = sshll.u32 %s1066_s18, 4  ;;  %s896_s11 = int_to_ptr.vmem [resolvable:$false] %s895_s11 }
 0x289   : > { %p898_p13 = scmp.lt.s32.totalorder %s1312_s4, %s896_s11 }
 0x28c   : > { %444 = vrot.lane.b32.xlu1 %v706_v22, %s1065_s20  ;;  %s897_s20 = scalar_lea.vmem %s896_s11, 256 }
 0x28d   : > { %p899_p3 = scmp.lt.s32.totalorder %s897_s20, %s891_s3 }
 0x28f   : > { %p900_p7 = por %p899_p3, %p898_p13 }
 0x291   : > { %p901_p1 = pnand %p900_p7, %p894_p12 }
 0x2f2   : > { %v428_v27 = vpop.permute.xlu0 %427  ;;  %v424_v28 = vpop.permute.xlu1 %423 }
 0x2f3   : > { %430 = vst.msk [vmem:[%s1308_s7] sm:$0xf] %vm418_vm2, %v428_v27  ;;  %426 = vst.msk [vmem:[%s314_s14] sm:$0xf] %vm418_vm2, %v424_v28 }
 0x2f6   : > { %v440_v29 = vpop.permute.xlu1 %439 }
 0x2f7   : > { %693 = vst.msk [vmem:[%s314_s14 + $0x4] sm:$0xf] %vm418_vm2, %v440_v29 }
 0x2f8   : > { %904 = shalt.err (!%p901_p1)
}
 0x2f9   : > { %s905_s10 = scalar_lea.hbm %s1320_s16, 128  ;;  %s909_s6 = scalar_lea.hbm %s1496_s9, 512 }
 0x2fa   : > { %p906_p2 = scmp.ne.s32.totalorder %s1320_s16, %s905_s10  ;;  %p910_p5 = scmp.lt.u32.totalorder %s1320_s16, %s1496_s9 }
 0x2fb   : > { %p911_p0 = scmp.lt.u32.totalorder %s909_s6, %s905_s10  ;;  %p913_p8 = scmp.lt.u32.totalorder %s905_s10, %s1320_s16 }
 0x2fc   : > { %p907_p4 = pnand %p906_p2, %p1209_p11 }
 0x2fd   : > { %p912_p6 = por %p911_p0, %p910_p5 }
 0x2fe   : > { %p908_p9 = pneg %p907_p4 }
 0x2ff   : > { %p914_p10 = por %p913_p8, %p912_p6 }
 0x301   : > { %p915_p12 = pnand %p914_p10, %p908_p9 }
 0x303   : > { %918 = shalt.err (!%p915_p12)
}
 0x304   : > { %s1067_s3 = smov 128   ;;  %s1068_s18 = smov 4   ;;  %v435_v30 = vpop.permute.xlu1 %434 }
 0x305   : > { %726 = dma.vmem_to_hbm [thread:$0]  (%p1209_p11), %s1312_s4, 128, %s1320_s16, %s1325_s30, %s1061_s19, %s1067_s3, %s1068_s18  }
 0x306   : > { %s1497_s10 = sld [smem:[#allocation21_spill]]  ;;  %s508_s14 = sshll.u32 %s1308_s7, 4  ;;  %692 = vst.msk [vmem:[%s1297_s21 + $0x4] sm:$0xf] %vm418_vm2, %v435_v30  ;;  %s1390_s14 = int_to_ptr.vmem [resolvable:$true] %s508_s14 }
 0x307   : > { %s450_s6 = scalar_lea.sflag [#allocation4], %s1271_s15  ;;  %s919_s25 = scalar_lea.vmem %s1323_s24, 128 }
 0x308   : > { %p920_p13 = scmp.ne.s32.totalorder %s1323_s24, %s919_s25  ;;  %s1069_s29 = smov [#allocation7]  }
 0x309   : > { %s923_s0 = sshll.u32 %s1069_s29, 4  ;;  %s924_s0 = int_to_ptr.vmem [resolvable:$false] %s923_s0 }
 0x30a   : > { %p921_p3 = pnand %p920_p13, %p1209_p11  ;;  %s925_s1 = scalar_lea.vmem %s924_s0, 256 }
 0x30b   : > { %p926_p1 = scmp.lt.s32.totalorder %s1323_s24, %s924_s0  ;;  %p927_p2 = scmp.lt.s32.totalorder %s925_s1, %s919_s25 }
 0x30c   : > { %s1356_s13 = scalar_lea.hbm %s1497_s10, %s1305_s5  ;;  %p922_p7 = pneg %p921_p3 }
 0x30d   : > { %p928_p4 = por %p927_p2, %p926_p1 }
 0x30f   : > { %p929_p9 = pnand %p928_p4, %p922_p7 }
 0x311   : > { %932 = shalt.err (!%p929_p9)
}
 0x312   : > { %s933_s21 = scalar_lea.hbm %s1356_s13, 128  ;;  %s937_s11 = scalar_lea.hbm %s1497_s10, 512 }
 0x313   : > { %p934_p5 = scmp.ne.s32.totalorder %s1356_s13, %s933_s21  ;;  %p938_p8 = scmp.lt.u32.totalorder %s1356_s13, %s1497_s10 }
 0x314   : > { %p939_p10 = scmp.lt.u32.totalorder %s937_s11, %s933_s21  ;;  %p941_p13 = scmp.lt.u32.totalorder %s933_s21, %s1356_s13 }
 0x315   : > { %p935_p0 = pnand %p934_p5, %p1209_p11 }
 0x316   : > { %p940_p12 = por %p939_p10, %p938_p8 }
 0x317   : > { %p936_p6 = pneg %p935_p0 }
 0x318   : > { %p942_p3 = por %p941_p13, %p940_p12 }
 0x31a   : > { %p943_p7 = pnand %p942_p3, %p936_p6 }
 0x31c   : > { %946 = shalt.err (!%p943_p7)
}
 0x31d   : > { %725 = dma.vmem_to_hbm [thread:$0]  (%p1209_p11), %s1323_s24, 128, %s1356_s13, %s450_s6, %s1061_s19, %s1067_s3, %s1068_s18   ;;  %v445_v31 = vpop.permute.xlu1 %444 }
 0x31e   : > { %s1498_s29 = sld [smem:[#allocation23_spill]]  ;;  %694 = vst.msk [vmem:[%s1308_s7 + $0x4] sm:$0xf] %vm418_vm2, %v445_v31  ;;  %s947_s15 = scalar_lea.vmem %s1390_s14, 128 }
 0x31f   : > { %p948_p1 = scmp.ne.s32.totalorder %s1390_s14, %s947_s15  ;;  %s1070_s24 = smov [#allocation10]  }
 0x320   : > { %s951_s13 = sshll.u32 %s1070_s24, 4  ;;  %s952_s13 = int_to_ptr.vmem [resolvable:$false] %s951_s13 }
 0x321   : > { %p949_p2 = pnand %p948_p1, %p1209_p11  ;;  %s953_s6 = scalar_lea.vmem %s952_s13, 256 }
 0x322   : > { %p954_p9 = scmp.lt.s32.totalorder %s1390_s14, %s952_s13  ;;  %p955_p5 = scmp.lt.s32.totalorder %s953_s6, %s947_s15 }
 0x323   : > { %p950_p4 = pneg %p949_p2 }
 0x324   : > { %s1396_s21 = scalar_lea.hbm %s1498_s29, %s1305_s5  ;;  %p956_p0 = por %p955_p5, %p954_p9 }
 0x326   : > { %p957_p6 = pnand %p956_p0, %p950_p4 }
 0x328   : > { %960 = shalt.err (!%p957_p6)
}
 0x329   : > { %s961_s5 = scalar_lea.hbm %s1396_s21, 128  ;;  %s965_s16 = scalar_lea.hbm %s1498_s29, 512 }
 0x32a   : > { %p962_p8 = scmp.ne.s32.totalorder %s1396_s21, %s961_s5  ;;  %p966_p13 = scmp.lt.u32.totalorder %s1396_s21, %s1498_s29 }
 0x32b   : > { %p967_p3 = scmp.lt.u32.totalorder %s965_s16, %s961_s5  ;;  %p969_p1 = scmp.lt.u32.totalorder %s961_s5, %s1396_s21 }
 0x32c   : > { %p963_p10 = pnand %p962_p8, %p1209_p11 }
 0x32d   : > { %p968_p7 = por %p967_p3, %p966_p13 }
 0x32e   : > { %p964_p12 = pneg %p963_p10 }
 0x32f   : > { %p970_p2 = por %p969_p1, %p968_p7 }
 0x331   : > { %p971_p4 = pnand %p970_p2, %p964_p12 }
 0x333   : > { %974 = shalt.err (!%p971_p4)
}
 0x334   : > { %727 = dma.vmem_to_hbm [thread:$0]  (%p1209_p11), %s1390_s14, 128, %s1396_s21, %s1325_s30, %s1061_s19, %s1067_s3, %s1068_s18  }
 0x335 PF: > { %s1499_s0 = sld [smem:[#allocation15_spill]]  ;;  %s1500_s1 = sld [smem:[#allocation16_spill]] }
 0x336   : > { %p752_p9 = scmp.ge.s32.totalorder %s1053_s28, 2 }
 0x33b   : > { %s523_s25 = sand.u32 1, %s1499_s0   ;;  %p1501_p5 = scmp.ne.s32.totalorder %s1500_s1, 0 }
 0x33c   : > { %s524_s15 = scalar_lea.sflag [#allocation4], %s523_s25 }
 0x33d   : > { %p740_p0 = pnand %p752_p9, %p1501_p5 }
 0x33f   : > { %1016 = dma.done.wait (!%p740_p0), %s524_s15, 128  }
 0x340   : > { %1018 = vsyncadd (!%p740_p0), %s524_s15, 4294967168  ;;  %s1502_s12 = sadd.s32 4294967294, %s1053_s28  }
 0x341   : > { %s532_s24 = sand.u32 1, %s1502_s12  }
 0x342   : > { %s533_s13 = scalar_lea.sflag [#allocation9], %s532_s24 }
 0x343   : > { %1020 = dma.done.wait (!%p740_p0), %s533_s13, 256  }
 0x344   : > { %1022 = vsyncadd (!%p740_p0), %s533_s13, 4294967040  ;;  %s27_s28 = sadd.s32 1, %s1053_s28   ;;  %s1503_s19 = sld [smem:[#allocation17_spill]] }
 0x345   : > { %p24_p11 = scmp.ge.s32.totalorder %s27_s28, 6   ;;  %s1504_s21 = smov %s1029_s22 }
 0x346   : > { %s1505_s22 = smov %s1033_s23  ;;  %s1506_s23 = smov %s1226_s8 }
 0x347   : > { %s1507_s24 = smov %s1045_s26  ;;  %s1508_s25 = smov %s1049_s27 }
 0x348   : > { %s1510_s27 = smov %s1516_s17  ;;  %26 = sbr.rel (!%p24_p11) target bundleno = 17 (0x11), region = 120 }
 0x34a   : > { %s1509_s26 = smov %s1503_s19 }
 0x34f   :  { %547 = vsyncpa [#allocation3], 1 }
 0x350   :  { %549 = vsyncpa [#allocation3 + $0x1], 1 }
 0x351   :  { %550 = vsyncpa [#allocation6], 1 }
 0x352   :  { %551 = vsyncpa [#allocation4], 1 }
 0x353   :  { %553 = vsyncpa [#allocation4 + $0x1], 1 }
 0x354   :  { %554 = vsyncpa [#allocation9], 1 }
 0x355   :  { %556 = vsyncpa [#allocation9 + $0x1], 1 }

// kernel: tpu_custom_call.1
= control target key start
LH: loop header
LB: loop body
LE: loop exit
PB: predicated region body
PF: predicated region fallthrough
CT: control target
= control target key end

     0   :  { %s1455_s0 = inlined_call_operand.hbm [shape: f32[2,16,32], index: 0, kind: input, shape index: {}]   ;;  %s1456_s1 = inlined_call_operand.vmem [shape: f32[1,32], index: 1, kind: input, shape index: {}]   ;;  %s1457_s2 = inlined_call_operand.vmem [shape: f32[1,32], index: 2, kind: input, shape index: {}]   ;;  %s1458_s3 = inlined_call_operand.hbm [shape: bf16[32,96], index: 3, kind: input, shape index: {}]   ;;  %s1459_s4 = inlined_call_operand.hbm [shape: bf16[2,2,16,16], index: 4, kind: output, shape index: {0}]   ;;  %s1460_s5 = inlined_call_operand.hbm [shape: bf16[2,2,16,16], index: 5, kind: output, shape index: {1}]   ;;  %s1461_s6 = inlined_call_operand.hbm [shape: bf16[2,2,16,16], index: 6, kind: output, shape index: {2}]  }
   0x1   :  { %1472 = sst [smem:[#allocation18_spill]] %s1455_s0 }
   0x2   :  { %1473 = sst [smem:[#allocation19_spill]] %s1456_s1 }
   0x3   :  { %1474 = sst [smem:[#allocation20_spill]] %s1458_s3 }
   0x4   :  { %1475 = sst [smem:[#allocation21_spill]] %s1459_s4 }
   0x5   :  { %1476 = sst [smem:[#allocation22_spill]] %s1460_s5 }
   0x6   :  { %1477 = sst [smem:[#allocation23_spill]] %s1461_s6 }
   0x7   :  { %12 = vsyncpa [#allocation3], 0 }
   0x8   :  { %14 = vsyncpa [#allocation3 + $0x1], 0 }
   0x9   :  { %15 = vsyncpa [#allocation6], 0 }
   0xa   :  { %16 = vsyncpa [#allocation4], 0 }
   0xb   :  { %18 = vsyncpa [#allocation4 + $0x1], 0 }
   0xc   :  { %19 = vsyncpa [#allocation9], 0 }
   0xd   :  { %21 = vsyncpa [#allocation9 + $0x1], 0  ;;  %s1106_s21 = smov 0   ;;  %s1108_s22 = smov 0  }
   0xe   :  { %s1110_s23 = smov 0   ;;  %s1112_s24 = smov 0  }
   0xf   :  { %s1114_s25 = smov 0   ;;  %s1116_s26 = smov 0  }
  0x10   :  { %s1118_s27 = smov 0   ;;  %s1120_s28 = smov 0  }
  0x11 LB: > { %1478 = sst [smem:[#allocation15_spill]] %s1025_s21  ;;  %s1147_s29 = sadd.s32 4294967295, %s1053_s28   ;;  %s1053_s28 = sphi %s1120_s28, %s27_s28   ;;  %s1049_s27 = sphi %s1118_s27, %s1510_s27   ;;  %s1045_s26 = sphi %s1116_s26, %s1509_s26   ;;  %s1041_s25 = sphi %s1114_s25, %s1508_s25   ;;  %s1037_s24 = sphi %s1112_s24, %s1507_s24   ;;  %s1033_s23 = sphi %s1110_s23, %s1506_s23   ;;  %s1029_s22 = sphi %s1108_s22, %s1505_s22   ;;  %s1025_s21 = sphi %s1106_s21, %s1504_s21  }
  0x12   : > { %s1465_s30 = sadd.s32 4294967294, %s1053_s28   ;;  %p61_p0 = scmp.ne.s32.totalorder %s1029_s22, %s1025_s21 }
  0x13   : > { %p1462_p1 = scmp.eq.s32.totalorder %s1147_s29, 0  ;;  %p156_p3 = scmp.eq.s32.totalorder %s1465_s30, 3 }
  0x14   : > { %p673_p5 = scmp.ge.s32.totalorder %s1053_s28, 1  ;;  %p219_p7 = scmp.lt.s32.totalorder %s1053_s28, 5 }
  0x15   : > { %p1158_p4 = por %p1462_p1, %p61_p0  ;;  %p1163_p6 = por %p156_p3, %p61_p0 }
  0x16   : > { %p1168_p8 = pnand %p673_p5, %p219_p7  ;;  %s1055_s10 = smov [#allocation5]  }
  0x17   : > { %s1479_s7 = scalar_select %p1158_p4, 1, 0 }
  0x18   : > { %s1480_s8 = scalar_select %p1163_p6, 1, 0 }
  0x19   : > { %s1482_s9 = scalar_select %p1168_p8, 1, 0 }
  0x1a   : > { %1481 = sst [smem:[#allocation16_spill]] %s1480_s8  ;;  %s237_s11 = sshll.u32 %s1055_s10, 4  ;;  %s238_s11 = int_to_ptr.vmem [resolvable:$true] %s237_s11 }
  0x1b   : > { %p731_p9 = pneg %p1168_p8  ;;  %s1484_s3 = sld [smem:[#allocation20_spill]] }
  0x1d   : > { %p1176_p10 = pnand %p731_p9, %p1462_p1 }
  0x1f   : > { %p835_p12 = pneg %p1176_p10 }
  0x21   : > { %s833_s15 = scalar_lea.hbm %s1484_s3, 256 }
  0x22   : > { %p834_p11 = scmp.ne.s32.totalorder %s1484_s3, %s833_s15  ;;  %p840_p3 = scmp.lt.u32.totalorder %s833_s15, %s1484_s3 }
  0x24   : > { %p836_p13 = pnand %p835_p12, %p834_p11 }
  0x26   : > { %p837_p0 = pneg %p836_p13 }
  0x28   : > { %p842_p5 = pnand %p840_p3, %p837_p0 }
  0x2a   : > { %845 = shalt.err (!%p842_p5)
}
  0x2b   : > { %s846_s20 = scalar_lea.vmem %s238_s11, 256  ;;  %p854_p2 = scmp.lt.s32.totalorder %s238_s11, %s238_s11 }
  0x2c   : > { %p847_p7 = scmp.ne.s32.totalorder %s238_s11, %s846_s20  ;;  %p855_p6 = scmp.lt.s32.totalorder %s846_s20, %s846_s20 }
  0x2e   : > { %p849_p9 = pnand %p847_p7, %p835_p12  ;;  %p856_p4 = por %p855_p6, %p854_p2 }
  0x30   : > { %p850_p1 = pneg %p849_p9 }
  0x32   : > { %p857_p8 = pnand %p856_p4, %p850_p1 }
  0x34   : > { %860 = shalt.err (!%p857_p8)
}
  0x35   : > { %s1056_s10 = smov 64   ;;  %s1057_s13 = smov 4  }
  0x36   : > { %734 = dma.hbm_to_vmem [thread:$0]  (!%p1176_p10), %s1484_s3, 256, %s238_s11, [#allocation6], %s1056_s10, %s1056_s10, %s1057_s13  }
  0x37   : > { %s36_s16 = sadd.s32 1, %s1045_s26  ;;  %s39_s17 = sadd.s32 1, %s1049_s27 }
  0x38   : > { %p37_p1 = scmp.ge.s32.totalorder %s36_s16, 2  ;;  %s48_s18 = sadd.s32 1, %s1033_s23 }
  0x39   : > { %p55_p2 = scmp.ne.s32.totalorder %s1033_s23, %s1029_s22  ;;  %p56_p4 = scmp.eq.s32.totalorder %s1053_s28, 0 }
  0x3a   : > { %s1512_s16 = smov (%p37_p1, %s36_s16), 0  ;;  %s1514_s17 = smov (!%p37_p1, %s39_s17), %s1049_s27 }
  0x3b   : > { %1485 = sst [smem:[#allocation17_spill]] %s1512_s16  ;;  %s44_s19 = ssub.s32 %s1045_s26, %s1512_s16 }
  0x3c   : > { %p41_p6 = scmp.ge.s32.totalorder %s1514_s17, 2  ;;  %p1486_p8 = scmp.eq.s32.totalorder %s1147_s29, 3 }
  0x3d   : > { %p1213_p10 = por %p56_p4, %p55_p2  ;;  %p750_p12 = scmp.lt.s32.totalorder %s1053_s28, 4 }
  0x3e   : > { %p1209_p11 = por %p1486_p8, %p55_p2  ;;  %s1516_s17 = smov (%p41_p6, %s1514_s17), 0 }
  0x3f   : > { %s251_s20 = sand.u32 1, %s1033_s23   ;;  %s677_s10 = sshll.u32 %s1049_s27, 1 }
  0x40   : > { %s43_s13 = ssub.s32 %s1049_s27, %s1516_s17  ;;  %s676_s15 = sshll.u32 %s251_s20, 3 }
  0x41   : > { %s45_s14 = sor.u32 %s44_s19, %s43_s13  ;;  %s260_s30 = sadd.s32 %s1045_s26, %s677_s10 }
  0x42   : > { %p46_p13 = scmp.eq.s32.totalorder %s45_s14, 0  ;;  %s255_s3 = scalar_lea.vmem [#allocation2], %s676_s15 }
  0x43   : > { %s264_s16 = sshll.u32 %s255_s3, 4  ;;  %s678_s21 = sshll.u32 %s260_s30, 7  ;;  %s1228_s16 = int_to_ptr.vmem [resolvable:$true] %s264_s16 }
  0x44   : > { %s1226_s8 = scalar_select %p46_p13, %s1033_s23, %s48_s18  }
  0x45   : > { %s1489_s0 = sld [smem:[#allocation18_spill]]  ;;  %p1239_p0 = pnand %p750_p12, %p1213_p10 }
  0x46   : > { %s252_s3 = scalar_lea.sflag [#allocation3], %s251_s20 }
  0x47   : > { %p863_p5 = pneg %p1239_p0 }
  0x4b   : > { %s1233_s5 = scalar_lea.hbm %s1489_s0, %s678_s21  ;;  %s866_s21 = scalar_lea.hbm %s1489_s0, 512 }
  0x4c   : > { %s861_s30 = scalar_lea.hbm %s1233_s5, 128  ;;  %p867_p1 = scmp.lt.u32.totalorder %s1233_s5, %s1489_s0 }
  0x4d   : > { %p862_p3 = scmp.ne.s32.totalorder %s1233_s5, %s861_s30  ;;  %p868_p2 = scmp.lt.u32.totalorder %s866_s21, %s861_s30 }
  0x4e   : > { %p870_p6 = scmp.lt.u32.totalorder %s861_s30, %s1233_s5 }
  0x4f   : > { %p864_p7 = pnand %p863_p5, %p862_p3  ;;  %p869_p4 = por %p868_p2, %p867_p1 }
  0x51   : > { %p865_p9 = pneg %p864_p7  ;;  %p871_p8 = por %p870_p6, %p869_p4 }
  0x53   : > { %p872_p10 = pnand %p871_p8, %p865_p9 }
  0x55   : > { %875 = shalt.err (!%p872_p10)
}
  0x56   : > { %s876_s20 = scalar_lea.vmem %s1228_s16, 128  ;;  %s1058_s10 = smov [#allocation2]  }
  0x57   : > { %p877_p12 = scmp.ne.s32.totalorder %s1228_s16, %s876_s20  ;;  %s881_s13 = sshll.u32 %s1058_s10, 4  ;;  %s882_s13 = int_to_ptr.vmem [resolvable:$false] %s881_s13 }
  0x58   : > { %s883_s14 = scalar_lea.vmem %s882_s13, 256  ;;  %p884_p7 = scmp.lt.s32.totalorder %s1228_s16, %s882_s13 }
  0x59   : > { %p879_p13 = pnand %p877_p12, %p863_p5  ;;  %p885_p1 = scmp.lt.s32.totalorder %s883_s14, %s876_s20 }
  0x5b   : > { %p880_p3 = pneg %p879_p13  ;;  %p886_p2 = por %p885_p1, %p884_p7 }
  0x5d   : > { %p887_p4 = pnand %p886_p2, %p880_p3 }
  0x5f   : > { %890 = shalt.err (!%p887_p4)
}
  0x60   : > { %738 = dma.hbm_to_vmem [thread:$0]  (!%p1239_p0), %s1233_s5, 128, %s1228_s16, %s252_s3  }
  0x61   : > { %p1491_p9 = scmp.ne.s32.totalorder %s1482_s9, 0 }
  0x62   : > { %s1271_s15 = sand.u32 (!%p1491_p9), 1, %s1029_s22   ;;  %p1492_p5 = scmp.ne.s32.totalorder (!%p1491_p9), %s1479_s7, 0 }
  0x63   : > { %273 = sbr.rel (%p1491_p9) target bundleno = 821 (0x335), region = 36  ;;  %s1274_s30 = sshll.u32 (!%p1491_p9), %s1271_s15, 3 }
  0x64   : > { %s276_s4 = scalar_lea.sflag (!%p1491_p9), [#allocation3], %s1271_s15  ;;  %s279_s6 = scalar_lea.vmem (!%p1491_p9), [#allocation2], %s1274_s30 }
  0x6a   : > { %1008 = dma.done.wait (%p1492_p5), %s276_s4, 128  }
  0x6b   : > { %1010 = vsyncadd (%p1492_p5), %s276_s4, 4294967168  ;;  %p1493_p0 = scmp.eq.s32.totalorder %s1147_s29, 0 }
  0x6d   : > { %1012 = dma.done.wait (%p1493_p0), [#allocation6], 256   ;;  %p1494_p6 = pmov %p1493_p0 }
  0x6e   : > { %vm326_vm0 = vcmask 261120   ;;  %v323_v0 = vld [vmem:[%s279_s6] sm:$0xff]  ;;  %v829_v7 = vld [vmem:[#allocation5] sm:$0xff]   ;;  %v1059_v8 = vmov 0.0   ;;  %vm1060_vm1 = vmmov 0   ;;  %v830_v9 = vld [vmem:[#allocation5 + $0x8] sm:$0xff]  }
  0x6f   : > { %1014 = vsyncadd (%p1494_p6), [#allocation6], 4294967040  ;;  %v327_v1 = vsel %vm326_vm0, %v323_v0, 0.0  ;;  %711 = vmatprep.subr.bf16.mxu0 %v1059_v8  ;;  %715 = vmatprep.mubr.msk.bf16.mxu0 %vm1060_vm1, %v1059_v8  ;;  %s1495_s1 = sld [smem:[#allocation19_spill]]  ;;  %v686_v16 = vld [vmem:[%s1457_s2] ss:$0 sm:$0xff] }
  0x70   : > { %328 = vadd.xlane.f32.xlu0 %v327_v1  ;;  %712 = vmatpush3.bf16.msra.mxu0 %v829_v7  ;;  %vm418_vm2 = vcmask 125952   ;;  %s1061_s19 = smov 64   ;;  %s1062_s3 = smov 96  }
  0x71   : > { %713 = vmatprep.subr.bf16.mxu0 %v1059_v8  ;;  %s1297_s21 = scalar_lea.vmem [#allocation7], %s1274_s30  ;;  %s1063_s18 = smov 80  }
  0x72   : > { %s1064_s11 = smov 112   ;;  %s1065_s20 = smov 48  }
  0x73   : > { %s698_s10 = sshll.u32 %s1041_s25, 2  ;;  %s314_s14 = scalar_lea.vmem [#allocation8], %s1274_s30 }
  0x74   : > { %714 = vmatpush3.bf16.msra.mxu0 %v830_v9  ;;  %s471_s13 = sadd.s32 %s1037_s24, %s698_s10  ;;  %s491_s4 = sshll.u32 %s314_s14, 4  ;;  %s1312_s4 = int_to_ptr.vmem [resolvable:$true] %s491_s4 }
  0x75   : > { %v685_v14 = vld [vmem:[%s1495_s1] ss:$0 sm:$0xff]  ;;  %s454_s6 = sand.u32 1, %s1147_s29   ;;  %s1305_s5 = sshll.u32 %s471_s13, 6 }
  0x76   : > { %s1308_s7 = scalar_lea.vmem [#allocation10], %s1274_s30  ;;  %s474_s24 = sshll.u32 %s1297_s21, 4  ;;  %s1323_s24 = int_to_ptr.vmem [resolvable:$true] %s474_s24 }
  0x77   : > { %s1496_s9 = sld [smem:[#allocation22_spill]]  ;;  %s1325_s30 = scalar_lea.sflag [#allocation9], %s454_s6 }
  0x7d   : > { %s1320_s16 = scalar_lea.hbm %s1496_s9, %s1305_s5 }
  0xfd   : > { %v329_v2 = vpop.xlane.xlu0 %328 }
  0xfe   : > { %v331_v3 = vmul.f32 0.03125, %v329_v2 }
 0x100   : > { %v332_v4 = vsub.f32 %v323_v0, %v331_v3 }
 0x102   : > { %v333_v5 = vmul.f32 %v332_v4, %v332_v4 }
 0x104   : > { %v334_v6 = vsel %vm326_vm0, %v333_v5, 0.0 }
 0x105   : > { %335 = vadd.xlane.f32.xlu0 %v334_v6 }
 0x192   : > { %v336_v10 = vpop.xlane.xlu0 %335 }
 0x193   : > { %v337_v11 = vmul.f32 0.03125, %v336_v10 }
 0x195   : > { %v338_v12 = vadd.f32 1e-05, %v337_v11 }
 0x197   : > { %831 = vrsqrt.f32 %v338_v12 }
 0x1a1   : > { %v832_v13 = vpop.eup %831 }
 0x1a2   : > { %v340_v15 = vmul.f32 %v832_v13, %v332_v4 }
 0x1a4   : > { %v347_v17 = vmul.f32 %v685_v14, %v340_v15 }
 0x1a6   : > { %v354_v18 = vadd.f32 %v686_v16, %v347_v17 }
 0x1a8   : > { %v355_v19 = vpack.c.bf16 %v354_v18, %v354_v18 }
 0x1aa   : > { %716 = vmatmul.mubr.msk.bf16.vlgmr.msra.gmra.mrb[0].mxu0 %vm326_vm0, %v355_v19 }
 0x27d   : > { %v409_v20 = vpop.f32.mrb[0].mxu0 }
 0x27e   : > { %v415_v21 = vmul.f32 0.25, %v409_v20  ;;  %v706_v22 = vpack.c.bf16 %v409_v20, %v409_v20  ;;  %v717_v23 = vpop.f32.mrb[1].mxu0 }
 0x27f   : > { %v412_v24 = vpop.f32.mrb[2].mxu0 }
 0x280   : > { %v416_v25 = vpack.c.bf16 %v415_v21, %v415_v21  ;;  %427 = vrot.lane.b32.xlu0 %v706_v22, %s1061_s19  ;;  %423 = vrot.lane.b32.xlu1 %v706_v22, %s1062_s3  ;;  %v718_v26 = vpop.f32.mrb[3].mxu0  ;;  %s891_s3 = scalar_lea.vmem %s1312_s4, 128 }
 0x281   : > { %p892_p8 = scmp.ne.s32.totalorder %s1312_s4, %s891_s3 }
 0x282   : > { %419 = vst.msk [vmem:[%s1297_s21] sm:$0xf] %vm418_vm2, %v416_v25 }
 0x283   : > { %p893_p10 = pnand %p892_p8, %p1209_p11 }
 0x284   : > { %439 = vrot.lane.b32.xlu1 %v706_v22, %s1063_s18  ;;  %s1066_s18 = smov [#allocation8]  }
 0x285   : > { %p894_p12 = pneg %p893_p10 }
 0x288   : > { %434 = vrot.lane.b32.xlu1 %v416_v25, %s1064_s11  ;;  %s895_s11 = sshll.u32 %s1066_s18, 4  ;;  %s896_s11 = int_to_ptr.vmem [resolvable:$false] %s895_s11 }
 0x289   : > { %p898_p13 = scmp.lt.s32.totalorder %s1312_s4, %s896_s11 }
 0x28c   : > { %444 = vrot.lane.b32.xlu1 %v706_v22, %s1065_s20  ;;  %s897_s20 = scalar_lea.vmem %s896_s11, 256 }
 0x28d   : > { %p899_p3 = scmp.lt.s32.totalorder %s897_s20, %s891_s3 }
 0x28f   : > { %p900_p7 = por %p899_p3, %p898_p13 }
 0x291   : > { %p901_p1 = pnand %p900_p7, %p894_p12 }
 0x2f2   : > { %v428_v27 = vpop.permute.xlu0 %427  ;;  %v424_v28 = vpop.permute.xlu1 %423 }
 0x2f3   : > { %430 = vst.msk [vmem:[%s1308_s7] sm:$0xf] %vm418_vm2, %v428_v27  ;;  %426 = vst.msk [vmem:[%s314_s14] sm:$0xf] %vm418_vm2, %v424_v28 }
 0x2f6   : > { %v440_v29 = vpop.permute.xlu1 %439 }
 0x2f7   : > { %693 = vst.msk [vmem:[%s314_s14 + $0x4] sm:$0xf] %vm418_vm2, %v440_v29 }
 0x2f8   : > { %904 = shalt.err (!%p901_p1)
}
 0x2f9   : > { %s905_s10 = scalar_lea.hbm %s1320_s16, 128  ;;  %s909_s6 = scalar_lea.hbm %s1496_s9, 512 }
 0x2fa   : > { %p906_p2 = scmp.ne.s32.totalorder %s1320_s16, %s905_s10  ;;  %p910_p5 = scmp.lt.u32.totalorder %s1320_s16, %s1496_s9 }
 0x2fb   : > { %p911_p0 = scmp.lt.u32.totalorder %s909_s6, %s905_s10  ;;  %p913_p8 = scmp.lt.u32.totalorder %s905_s10, %s1320_s16 }
 0x2fc   : > { %p907_p4 = pnand %p906_p2, %p1209_p11 }
 0x2fd   : > { %p912_p6 = por %p911_p0, %p910_p5 }
 0x2fe   : > { %p908_p9 = pneg %p907_p4 }
 0x2ff   : > { %p914_p10 = por %p913_p8, %p912_p6 }
 0x301   : > { %p915_p12 = pnand %p914_p10, %p908_p9 }
 0x303   : > { %918 = shalt.err (!%p915_p12)
}
 0x304   : > { %s1067_s3 = smov 128   ;;  %s1068_s18 = smov 4   ;;  %v435_v30 = vpop.permute.xlu1 %434 }
 0x305   : > { %726 = dma.vmem_to_hbm [thread:$0]  (%p1209_p11), %s1312_s4, 128, %s1320_s16, %s1325_s30, %s1061_s19, %s1067_s3, %s1068_s18  }
 0x306   : > { %s1497_s10 = sld [smem:[#allocation21_spill]]  ;;  %s508_s14 = sshll.u32 %s1308_s7, 4  ;;  %692 = vst.msk [vmem:[%s1297_s21 + $0x4] sm:$0xf] %vm418_vm2, %v435_v30  ;;  %s1390_s14 = int_to_ptr.vmem [resolvable:$true] %s508_s14 }
 0x307   : > { %s450_s6 = scalar_lea.sflag [#allocation4], %s1271_s15  ;;  %s919_s25 = scalar_lea.vmem %s1323_s24, 128 }
 0x308   : > { %p920_p13 = scmp.ne.s32.totalorder %s1323_s24, %s919_s25  ;;  %s1069_s29 = smov [#allocation7]  }
 0x309   : > { %s923_s0 = sshll.u32 %s1069_s29, 4  ;;  %s924_s0 = int_to_ptr.vmem [resolvable:$false] %s923_s0 }
 0x30a   : > { %p921_p3 = pnand %p920_p13, %p1209_p11  ;;  %s925_s1 = scalar_lea.vmem %s924_s0, 256 }
 0x30b   : > { %p926_p1 = scmp.lt.s32.totalorder %s1323_s24, %s924_s0  ;;  %p927_p2 = scmp.lt.s32.totalorder %s925_s1, %s919_s25 }
 0x30c   : > { %s1356_s13 = scalar_lea.hbm %s1497_s10, %s1305_s5  ;;  %p922_p7 = pneg %p921_p3 }
 0x30d   : > { %p928_p4 = por %p927_p2, %p926_p1 }
 0x30f   : > { %p929_p9 = pnand %p928_p4, %p922_p7 }
 0x311   : > { %932 = shalt.err (!%p929_p9)
}
 0x312   : > { %s933_s21 = scalar_lea.hbm %s1356_s13, 128  ;;  %s937_s11 = scalar_lea.hbm %s1497_s10, 512 }
 0x313   : > { %p934_p5 = scmp.ne.s32.totalorder %s1356_s13, %s933_s21  ;;  %p938_p8 = scmp.lt.u32.totalorder %s1356_s13, %s1497_s10 }
 0x314   : > { %p939_p10 = scmp.lt.u32.totalorder %s937_s11, %s933_s21  ;;  %p941_p13 = scmp.lt.u32.totalorder %s933_s21, %s1356_s13 }
 0x315   : > { %p935_p0 = pnand %p934_p5, %p1209_p11 }
 0x316   : > { %p940_p12 = por %p939_p10, %p938_p8 }
 0x317   : > { %p936_p6 = pneg %p935_p0 }
 0x318   : > { %p942_p3 = por %p941_p13, %p940_p12 }
 0x31a   : > { %p943_p7 = pnand %p942_p3, %p936_p6 }
 0x31c   : > { %946 = shalt.err (!%p943_p7)
}
 0x31d   : > { %725 = dma.vmem_to_hbm [thread:$0]  (%p1209_p11), %s1323_s24, 128, %s1356_s13, %s450_s6, %s1061_s19, %s1067_s3, %s1068_s18   ;;  %v445_v31 = vpop.permute.xlu1 %444 }
 0x31e   : > { %s1498_s29 = sld [smem:[#allocation23_spill]]  ;;  %694 = vst.msk [vmem:[%s1308_s7 + $0x4] sm:$0xf] %vm418_vm2, %v445_v31  ;;  %s947_s15 = scalar_lea.vmem %s1390_s14, 128 }
 0x31f   : > { %p948_p1 = scmp.ne.s32.totalorder %s1390_s14, %s947_s15  ;;  %s1070_s24 = smov [#allocation10]  }
 0x320   : > { %s951_s13 = sshll.u32 %s1070_s24, 4  ;;  %s952_s13 = int_to_ptr.vmem [resolvable:$false] %s951_s13 }
 0x321   : > { %p949_p2 = pnand %p948_p1, %p1209_p11  ;;  %s953_s6 = scalar_lea.vmem %s952_s13, 256 }
 0x322   : > { %p954_p9 = scmp.lt.s32.totalorder %s1390_s14, %s952_s13  ;;  %p955_p5 = scmp.lt.s32.totalorder %s953_s6, %s947_s15 }
 0x323   : > { %p950_p4 = pneg %p949_p2 }
 0x324   : > { %s1396_s21 = scalar_lea.hbm %s1498_s29, %s1305_s5  ;;  %p956_p0 = por %p955_p5, %p954_p9 }
 0x326   : > { %p957_p6 = pnand %p956_p0, %p950_p4 }
 0x328   : > { %960 = shalt.err (!%p957_p6)
}
 0x329   : > { %s961_s5 = scalar_lea.hbm %s1396_s21, 128  ;;  %s965_s16 = scalar_lea.hbm %s1498_s29, 512 }
 0x32a   : > { %p962_p8 = scmp.ne.s32.totalorder %s1396_s21, %s961_s5  ;;  %p966_p13 = scmp.lt.u32.totalorder %s1396_s21, %s1498_s29 }
 0x32b   : > { %p967_p3 = scmp.lt.u32.totalorder %s965_s16, %s961_s5  ;;  %p969_p1 = scmp.lt.u32.totalorder %s961_s5, %s1396_s21 }
 0x32c   : > { %p963_p10 = pnand %p962_p8, %p1209_p11 }
 0x32d   : > { %p968_p7 = por %p967_p3, %p966_p13 }
 0x32e   : > { %p964_p12 = pneg %p963_p10 }
 0x32f   : > { %p970_p2 = por %p969_p1, %p968_p7 }
 0x331   : > { %p971_p4 = pnand %p970_p2, %p964_p12 }
 0x333   : > { %974 = shalt.err (!%p971_p4)
}
 0x334   : > { %727 = dma.vmem_to_hbm [thread:$0]  (%p1209_p11), %s1390_s14, 128, %s1396_s21, %s1325_s30, %s1061_s19, %s1067_s3, %s1068_s18  }
 0x335 PF: > { %s1499_s0 = sld [smem:[#allocation15_spill]]  ;;  %s1500_s1 = sld [smem:[#allocation16_spill]] }
 0x336   : > { %p752_p9 = scmp.ge.s32.totalorder %s1053_s28, 2 }
 0x33b   : > { %s523_s25 = sand.u32 1, %s1499_s0   ;;  %p1501_p5 = scmp.ne.s32.totalorder %s1500_s1, 0 }
 0x33c   : > { %s524_s15 = scalar_lea.sflag [#allocation4], %s523_s25 }
 0x33d   : > { %p740_p0 = pnand %p752_p9, %p1501_p5 }
 0x33f   : > { %1016 = dma.done.wait (!%p740_p0), %s524_s15, 128  }
 0x340   : > { %1018 = vsyncadd (!%p740_p0), %s524_s15, 4294967168  ;;  %s1502_s12 = sadd.s32 4294967294, %s1053_s28  }
 0x341   : > { %s532_s24 = sand.u32 1, %s1502_s12  }
 0x342   : > { %s533_s13 = scalar_lea.sflag [#allocation9], %s532_s24 }
 0x343   : > { %1020 = dma.done.wait (!%p740_p0), %s533_s13, 256  }
 0x344   : > { %1022 = vsyncadd (!%p740_p0), %s533_s13, 4294967040  ;;  %s27_s28 = sadd.s32 1, %s1053_s28   ;;  %s1503_s19 = sld [smem:[#allocation17_spill]] }
 0x345   : > { %p24_p11 = scmp.ge.s32.totalorder %s27_s28, 6   ;;  %s1504_s21 = smov %s1029_s22 }
 0x346   : > { %s1505_s22 = smov %s1033_s23  ;;  %s1506_s23 = smov %s1226_s8 }
 0x347   : > { %s1507_s24 = smov %s1045_s26  ;;  %s1508_s25 = smov %s1049_s27 }
 0x348   : > { %s1510_s27 = smov %s1516_s17  ;;  %26 = sbr.rel (!%p24_p11) target bundleno = 17 (0x11), region = 120 }
 0x34a   : > { %s1509_s26 = smov %s1503_s19 }
 0x34f   :  { %547 = vsyncpa [#allocation3], 1 }
 0x350   :  { %549 = vsyncpa [#allocation3 + $0x1], 1 }
 0x351   :  { %550 = vsyncpa [#allocation6], 1 }
 0x352   :  { %551 = vsyncpa [#allocation4], 1 }
 0x353   :  { %553 = vsyncpa [#allocation4 + $0x1], 1 }
 0x354   :  { %554 = vsyncpa [#allocation9], 1 }
 0x355   :  { %556 = vsyncpa [#allocation9 + $0x1], 1 }

</bundles_post_ra>
